<compile_context>
chip_gen: v7x
topology: tpu7x:2x2x1
jax: 0.10.0
libtpu: 0.0.40
codegen_flags: <defaults>
</compile_context>

<pallas_src>
import functools

import jax
import jax.numpy as jnp
from jax import lax
from jax.experimental import pallas as pl
from jax.experimental.pallas import tpu as pltpu

DILATIONS = (1, 2, 3)
MAXD = max(DILATIONS)
BN_EPS = 1e-5


def _round_up(v, m):
    return (v + m - 1) // m * m


def inverted_residual_kernel(x_ref, w1_ref, w3_ref, w2_ref, bn_ref,
                             out_ref, pad_ref, patch_ref,
                             *, H, W, cg, OFF, PAD):
    HW = H * W
    C3 = 3 * cg

    s1, b1 = bn_ref[0], bn_ref[1]
    s3, b3 = bn_ref[2], bn_ref[3]
    s2, b2 = bn_ref[4], bn_ref[5]

    # ---- stage 1: fused block-diagonal 1x1 conv (all 3 branches) + BN + ReLU
    x = x_ref[0].astype(jnp.bfloat16)                          # (3cg, HW)
    t = jnp.dot(w1_ref[...], x, preferred_element_type=jnp.float32)
    t = jnp.maximum(t * s1 + b1, 0.0)                          # f32 (3cg, HW)

    # ---- stage 2: the three 3x3 dilated convs as ONE fused matmul ----------
    # zero only the (lane-aligned) halo strips, then store the interior with
    # an unmasked, 128-aligned vector store.
    pad_ref[:, :OFF] = jnp.zeros((C3, OFF), jnp.float32)
    pad_ref[:, OFF + HW:] = jnp.zeros((C3, PAD - OFF - HW), jnp.float32)
    pad_ref[:, OFF:OFF + HW] = t

    # horizontal border masks, one per distinct dx (hoisted out of the tap loop);
    # vertical borders are handled by the zeroed halo columns.
    x_idx = lax.broadcasted_iota(jnp.int32, (cg, HW), 1) % W
    col_mask = {}
    for d in DILATIONS:
        col_mask[d] = x_idx < W - d
        col_mask[-d] = x_idx >= d

    # build the stacked shifted-tap buffer (27*cg, HW), g-major / ky / kx order
    for g, d in enumerate(DILATIONS):
        rows = slice(g * cg, (g + 1) * cg)
        for ky in range(3):
            for kx in range(3):
                dy = (ky - 1) * d
                dx = (kx - 1) * d
                start = OFF + dy * W + dx
                p = pad_ref[rows, start:start + HW]
                if dx != 0:
                    p = jnp.where(col_mask[dx], p, 0.0)
                tap = g * 9 + ky * 3 + kx
                patch_ref[tap * cg:(tap + 1) * cg, :] = p

    u = jnp.dot(w3_ref[...], patch_ref[...].astype(jnp.bfloat16),
                preferred_element_type=jnp.float32)
    u = u * s3 + b3                                            # f32 (3cg, HW)

    # ---- stage 3: fused block-diagonal 1x1 conv + BN + ReLU ----------------
    v = jnp.dot(w2_ref[...], u.astype(jnp.bfloat16),
                preferred_element_type=jnp.float32)
    v = jnp.maximum(v * s2 + b2, 0.0)

    out_ref[0] = v.astype(out_ref.dtype)


def my_inverted_residual(x_nchw, params):
    """Pallas implementation of myInvertedResidual.forward (NCHW in/out)."""
    w1, w3, w2, s1, b1, s3, b3, s2, b2 = params
    N, C, H, W = x_nchw.shape
    cg = C // 4
    C3 = 3 * cg
    HW = H * W

    halo = MAXD * W + MAXD
    OFF = _round_up(halo, 128)                 # lane-aligned interior offset
    PAD = OFF + _round_up(HW + halo, 128)      # lane-aligned total width

    # ---- one-time parameter packing (pure JAX) -----------------------------
    def block_diag(w):                         # (3, co, ci) -> (3co, 3ci)
        out = jnp.zeros((C3, C3), w.dtype)
        for g in range(3):
            out = out.at[g * cg:(g + 1) * cg, g * cg:(g + 1) * cg].set(w[g])
        return out

    w1_bd = block_diag(w1).astype(jnp.bfloat16)
    w2_bd = block_diag(w2).astype(jnp.bfloat16)

    # fused 3x3 weight: block-diagonal over (branch, tap) -> (3cg, 27cg)
    w3_f = jnp.zeros((C3, 27 * cg), w3.dtype)
    for g in range(3):
        for ky in range(3):
            for kx in range(3):
                tap = g * 9 + ky * 3 + kx
                w3_f = w3_f.at[g * cg:(g + 1) * cg,
                               tap * cg:(tap + 1) * cg].set(w3[g, :, :, ky, kx])
    w3_f = w3_f.astype(jnp.bfloat16)

    bn = jnp.stack([s1.reshape(-1), b1.reshape(-1),
                    s3.reshape(-1), b3.reshape(-1),
                    s2.reshape(-1), b2.reshape(-1)])[..., None]   # (6, 3cg, 1) f32

    # only the 3 conv branches go through the kernel (identity stays in HBM:
    # saves ~25% of HBM read+write traffic)
    x_br = x_nchw[:, cg:].reshape(N, C3, HW)

    kernel = functools.partial(inverted_residual_kernel,
                               H=H, W=W, cg=cg, OFF=OFF, PAD=PAD)

    out_br = pl.pallas_call(
        kernel,
        out_shape=jax.ShapeDtypeStruct((N, C3, HW), x_nchw.dtype),
        grid_spec=pltpu.PrefetchScalarGridSpec(
            num_scalar_prefetch=0,
            grid=(N,),
            in_specs=[
                pl.BlockSpec((1, C3, HW), lambda n: (n, 0, 0)),
                pl.BlockSpec((C3, C3), lambda n: (0, 0)),
                pl.BlockSpec((C3, 27 * cg), lambda n: (0, 0)),
                pl.BlockSpec((C3, C3), lambda n: (0, 0)),
                pl.BlockSpec((6, C3, 1), lambda n: (0, 0, 0)),
            ],
            out_specs=pl.BlockSpec((1, C3, HW), lambda n: (n, 0, 0)),
            scratch_shapes=[pltpu.VMEM((C3, PAD), jnp.float32),
                            pltpu.VMEM((27 * cg, HW), jnp.float32)],
        ),
        compiler_params=pltpu.CompilerParams(
            # batch elements are independent -> megacore / v7x 2-TC sharding
            dimension_semantics=("parallel",)),
    )(x_br, w1_bd, w3_f, w2_bd, bn)

    # concat identity branch -> channel_shuffle(groups=4) -> NCHW
    out = jnp.concatenate(
        [x_nchw[:, :cg].reshape(N, 1, cg, H, W),
         out_br.reshape(N, 3, cg, H, W)], axis=1)
    out = out.transpose(0, 2, 1, 3, 4).reshape(N, C, H, W)
    return out


def init_params(key, cg, nb=3):
    ks = jax.random.split(key, 15)
    w1 = jax.random.normal(ks[0], (nb, cg, cg), jnp.float32) / jnp.sqrt(cg)
    w3 = jax.random.normal(ks[1], (nb, cg, cg, 3, 3), jnp.float32) / jnp.sqrt(9 * cg)
    w2 = jax.random.normal(ks[2], (nb, cg, cg), jnp.float32) / jnp.sqrt(cg)

    def bn_fold(k0, k1, k2, k3):
        gamma = 1.0 + 0.1 * jax.random.normal(k0, (nb, cg), jnp.float32)
        beta = 0.1 * jax.random.normal(k1, (nb, cg), jnp.float32)
        mean = 0.1 * jax.random.normal(k2, (nb, cg), jnp.float32)
        var = jax.random.uniform(k3, (nb, cg), jnp.float32, minval=0.5, maxval=1.5)
        scale = gamma / jnp.sqrt(var + BN_EPS)
        return scale, beta - mean * scale

    s1, b1 = bn_fold(*ks[3:7])
    s3, b3 = bn_fold(*ks[7:11])
    s2, b2 = bn_fold(*ks[11:15])
    return w1, w3, w2, s1, b1, s3, b3, s2, b2


def ref_forward(x, w1, w3, w2, s1, b1, s3, b3, s2, b2,
                operand_dtype=jnp.float32):
    """Pure-JAX reference (eval-mode BN). operand_dtype=bfloat16 mirrors the
    kernel's MXU numerics (bf16 operands, exact products, f32 accumulation)."""
    N, C, H, W = x.shape
    cg = C // 4

    def cast(a):
        return a.astype(operand_dtype)

    def bn(y, scale, bias):
        return y * scale[None, :, None, None] + bias[None, :, None, None]

    def conv1x1(y, w):
        return lax.conv_general_dilated(
            cast(y), cast(w[:, :, None, None]), (1, 1), 'VALID',
            dimension_numbers=('NCHW', 'OIHW', 'NCHW'),
            preferred_element_type=jnp.float32,
            precision=lax.Precision.HIGHEST)

    def conv3x3(y, w, d):
        return lax.conv_general_dilated(
            cast(y), cast(w), (1, 1), [(d, d), (d, d)], rhs_dilation=(d, d),
            dimension_numbers=('NCHW', 'OIHW', 'NCHW'),
            preferred_element_type=jnp.float32,
            precision=lax.Precision.HIGHEST)

    outs = [x[:, :cg]]
    for g, d in enumerate(DILATIONS):
        xb = x[:, (g + 1) * cg:(g + 2) * cg]
        y = jnp.maximum(bn(conv1x1(xb, w1[g]), s1[g], b1[g]), 0.0)
        y = bn(conv3x3(y, w3[g], d), s3[g], b3[g])
        y = jnp.maximum(bn(conv1x1(y, w2[g]), s2[g], b2[g]), 0.0)
        outs.append(y)
    out = jnp.concatenate(outs, axis=1)
    # channel_shuffle with groups=4
    out = out.reshape(N, 4, cg, H, W).transpose(0, 2, 1, 3, 4).reshape(N, C, H, W)
    return out


if __name__ == "__main__":
    key = jax.random.PRNGKey(0)
    N, C, H, W = 2, 32, 16, 16            # inchannel=32 -> channel_group=8
    cg = C // 4
    k_x, k_p = jax.random.split(key)
    x = jax.random.normal(k_x, (N, C, H, W), jnp.float32)
    params = init_params(k_p, cg)

    out = jax.block_until_ready(my_inverted_residual(x, params))
    assert out.shape == (N, C, H, W)

    # validate against a reference that matches the kernel's matmul numerics
    # (bf16 operands, f32 accumulation) — tolerance re-derived for bf16 operands
    ref_matched = ref_forward(x, *params, operand_dtype=jnp.bfloat16)
    err = float(jnp.max(jnp.abs(out - ref_matched)))
    if err < 1e-2:
        print("KERNEL_OK")
    else:
        ref_f32 = ref_forward(x, *params, operand_dtype=jnp.float32)
        print("MAX_ERR vs bf16-matched ref:", err,
              " vs f32 ref:", float(jnp.max(jnp.abs(out - ref_f32))))
</pallas_src>

<mosaic_0001>
module attributes {stable_mosaic.version = 11 : i64} {
  func.func @inverted_residual_kernel(%arg0: i32, %arg1: memref<1x24x256xf32, #tpu.memory_space<vmem>>, %arg2: memref<24x24xbf16, #tpu.memory_space<vmem>>, %arg3: memref<24x216xbf16, #tpu.memory_space<vmem>>, %arg4: memref<24x24xbf16, #tpu.memory_space<vmem>>, %arg5: memref<6x24x1xf32, #tpu.memory_space<vmem>>, %arg6: memref<1x24x256xf32, #tpu.memory_space<vmem>>, %arg7: memref<24x512xf32, #tpu.memory_space<vmem>>, %arg8: memref<216x256xf32, #tpu.memory_space<vmem>>) attributes {dimension_semantics = [#tpu.dimension_semantics<parallel>], iteration_bounds = array<i64: 2>, scalar_prefetch = 0 : i64, scratch_operands = 2 : i64, tpu.core_type = #tpu.core_type<tc>, window_params = [{transform_indices = @transform_0, window_bounds = array<i64: 1, 24, 256>}, {pipeline_mode = #tpu.pipeline_mode<synchronous>, transform_indices = @transform_1, window_bounds = array<i64: 24, 24>}, {pipeline_mode = #tpu.pipeline_mode<synchronous>, transform_indices = @transform_2, window_bounds = array<i64: 24, 216>}, {pipeline_mode = #tpu.pipeline_mode<synchronous>, transform_indices = @transform_3, window_bounds = array<i64: 24, 24>}, {pipeline_mode = #tpu.pipeline_mode<synchronous>, transform_indices = @transform_4, window_bounds = array<i64: 6, 24, 1>}, {transform_indices = @transform_5, window_bounds = array<i64: 1, 24, 256>}]} {
    %c0 = arith.constant 0 : index
    %c0_0 = arith.constant 0 : index
    %c0_1 = arith.constant 0 : index
    %0 = vector.load %arg5[%c0, %c0_0, %c0_1] : memref<6x24x1xf32, #tpu.memory_space<vmem>>, vector<1x24x1xf32>
    %1 = vector.shape_cast %0 : vector<1x24x1xf32> to vector<24x1xf32>
    %c1 = arith.constant 1 : index
    %c0_2 = arith.constant 0 : index
    %c0_3 = arith.constant 0 : index
    %2 = vector.load %arg5[%c1, %c0_2, %c0_3] : memref<6x24x1xf32, #tpu.memory_space<vmem>>, vector<1x24x1xf32>
    %3 = vector.shape_cast %2 : vector<1x24x1xf32> to vector<24x1xf32>
    %c2 = arith.constant 2 : index
    %c0_4 = arith.constant 0 : index
    %c0_5 = arith.constant 0 : index
    %4 = vector.load %arg5[%c2, %c0_4, %c0_5] : memref<6x24x1xf32, #tpu.memory_space<vmem>>, vector<1x24x1xf32>
    %5 = vector.shape_cast %4 : vector<1x24x1xf32> to vector<24x1xf32>
    %c3 = arith.constant 3 : index
    %c0_6 = arith.constant 0 : index
    %c0_7 = arith.constant 0 : index
    %6 = vector.load %arg5[%c3, %c0_6, %c0_7] : memref<6x24x1xf32, #tpu.memory_space<vmem>>, vector<1x24x1xf32>
    %7 = vector.shape_cast %6 : vector<1x24x1xf32> to vector<24x1xf32>
    %c4 = arith.constant 4 : index
    %c0_8 = arith.constant 0 : index
    %c0_9 = arith.constant 0 : index
    %8 = vector.load %arg5[%c4, %c0_8, %c0_9] : memref<6x24x1xf32, #tpu.memory_space<vmem>>, vector<1x24x1xf32>
    %9 = vector.shape_cast %8 : vector<1x24x1xf32> to vector<24x1xf32>
    %c5 = arith.constant 5 : index
    %c0_10 = arith.constant 0 : index
    %c0_11 = arith.constant 0 : index
    %10 = vector.load %arg5[%c5, %c0_10, %c0_11] : memref<6x24x1xf32, #tpu.memory_space<vmem>>, vector<1x24x1xf32>
    %11 = vector.shape_cast %10 : vector<1x24x1xf32> to vector<24x1xf32>
    %c0_12 = arith.constant 0 : index
    %c0_13 = arith.constant 0 : index
    %c0_14 = arith.constant 0 : index
    %12 = vector.load %arg1[%c0_12, %c0_13, %c0_14] : memref<1x24x256xf32, #tpu.memory_space<vmem>>, vector<1x24x256xf32>
    %13 = vector.shape_cast %12 : vector<1x24x256xf32> to vector<24x256xf32>
    %14 = arith.truncf %13 : vector<24x256xf32> to vector<24x256xbf16>
    %c0_15 = arith.constant 0 : index
    %c0_16 = arith.constant 0 : index
    %15 = vector.load %arg2[%c0_15, %c0_16] : memref<24x24xbf16, #tpu.memory_space<vmem>>, vector<24x24xbf16>
    %cst = arith.constant dense<0.000000e+00> : vector<24x256xf32>
    %16 = tpu.matmul %15, %14, %cst {dimension_numbers = #tpu.dot_dimension_numbers<[1], [0], [0], [1], [0, 0, 1, 1], [], []>} : vector<24x24xbf16>, vector<24x256xbf16>, vector<24x256xf32> -> vector<24x256xf32>
    %17 = vector.broadcast %1 : vector<24x1xf32> to vector<24x256xf32>
    %18 = arith.mulf %16, %17 : vector<24x256xf32>
    %19 = vector.broadcast %3 : vector<24x1xf32> to vector<24x256xf32>
    %20 = arith.addf %18, %19 : vector<24x256xf32>
    %cst_17 = arith.constant 0.000000e+00 : f32
    %21 = vector.broadcast %cst_17 : f32 to vector<24x256xf32>
    %22 = arith.maximumf %20, %21 : vector<24x256xf32>
    %cst_18 = arith.constant 0.000000e+00 : f32
    %23 = vector.broadcast %cst_18 : f32 to vector<24x128xf32>
    %c0_19 = arith.constant 0 : index
    %c0_20 = arith.constant 0 : index
    %24 = vector.load %arg7[%c0_19, %c0_20] : memref<24x512xf32, #tpu.memory_space<vmem>>, vector<24x128xf32>
    tpu.vector_store %arg7[%c0_19, %c0_20], %23 {strides = array<i32>} : memref<24x512xf32, #tpu.memory_space<vmem>>, vector<24x128xf32>,
    %cst_21 = arith.constant 0.000000e+00 : f32
    %25 = vector.broadcast %cst_21 : f32 to vector<24x128xf32>
    %c0_22 = arith.constant 0 : index
    %c384 = arith.constant 384 : index
    %26 = vector.load %arg7[%c0_22, %c384] : memref<24x512xf32, #tpu.memory_space<vmem>>, vector<24x128xf32>
    tpu.vector_store %arg7[%c0_22, %c384], %25 {strides = array<i32>} : memref<24x512xf32, #tpu.memory_space<vmem>>, vector<24x128xf32>,
    %c0_23 = arith.constant 0 : index
    %c128 = arith.constant 128 : index
    %27 = vector.load %arg7[%c0_23, %c128] : memref<24x512xf32, #tpu.memory_space<vmem>>, vector<24x256xf32>
    tpu.vector_store %arg7[%c0_23, %c128], %22 {strides = array<i32>} : memref<24x512xf32, #tpu.memory_space<vmem>>, vector<24x256xf32>,
    %28 = tpu.iota {dimensions = array<i32: 1>} : vector<8x256xi32>
    %c16_i32 = arith.constant 16 : i32
    %c0_i32 = arith.constant 0 : i32
    %29 = arith.cmpi eq, %c16_i32, %c0_i32 : i32
    %c1_i32 = arith.constant 1 : i32
    %30 = arith.select %29, %c1_i32, %c16_i32 : i32
    %31 = vector.broadcast %30 : i32 to vector<8x256xi32>
    %32 = arith.remsi %28, %31 : vector<8x256xi32>
    %c0_i32_24 = arith.constant 0 : i32
    %33 = vector.broadcast %c0_i32_24 : i32 to vector<8x256xi32>
    %34 = arith.cmpi ne, %32, %33 : vector<8x256xi32>
    %c0_i32_25 = arith.constant 0 : i32
    %35 = vector.broadcast %c0_i32_25 : i32 to vector<8x256xi32>
    %36 = arith.cmpi slt, %32, %35 : vector<8x256xi32>
    %c0_i32_26 = arith.constant 0 : i32
    %37 = arith.cmpi slt, %30, %c0_i32_26 : i32
    %38 = vector.broadcast %37 : i1 to vector<8x256xi1>
    %39 = vector.broadcast %38 : vector<8x256xi1> to vector<8x256xi1>
    %40 = arith.xori %36, %39 : vector<8x256xi1>
    %41 = arith.andi %40, %34 : vector<8x256xi1>
    %42 = vector.broadcast %30 : i32 to vector<8x256xi32>
    %43 = arith.addi %32, %42 : vector<8x256xi32>
    %44 = arith.select %41, %43, %32 : vector<8x256xi1>, vector<8x256xi32>
    %c15_i32 = arith.constant 15 : i32
    %45 = vector.broadcast %c15_i32 : i32 to vector<8x256xi32>
    %46 = arith.cmpi slt, %44, %45 : vector<8x256xi32>
    %c1_i32_27 = arith.constant 1 : i32
    %47 = vector.broadcast %c1_i32_27 : i32 to vector<8x256xi32>
    %48 = arith.cmpi sge, %44, %47 : vector<8x256xi32>
    %c14_i32 = arith.constant 14 : i32
    %49 = vector.broadcast %c14_i32 : i32 to vector<8x256xi32>
    %50 = arith.cmpi slt, %44, %49 : vector<8x256xi32>
    %c2_i32 = arith.constant 2 : i32
    %51 = vector.broadcast %c2_i32 : i32 to vector<8x256xi32>
    %52 = arith.cmpi sge, %44, %51 : vector<8x256xi32>
    %c13_i32 = arith.constant 13 : i32
    %53 = vector.broadcast %c13_i32 : i32 to vector<8x256xi32>
    %54 = arith.cmpi slt, %44, %53 : vector<8x256xi32>
    %c3_i32 = arith.constant 3 : i32
    %55 = vector.broadcast %c3_i32 : i32 to vector<8x256xi32>
    %56 = arith.cmpi sge, %44, %55 : vector<8x256xi32>
    %c0_28 = arith.constant 0 : index
    %c111 = arith.constant 111 : index
    %57 = vector.load %arg7[%c0_28, %c111] : memref<24x512xf32, #tpu.memory_space<vmem>>, vector<8x256xf32>
    %cst_29 = arith.constant 0.000000e+00 : f32
    %58 = vector.broadcast %cst_29 : f32 to vector<8x256xf32>
    %59 = arith.select %48, %57, %58 : vector<8x256xi1>, vector<8x256xf32>
    %c0_30 = arith.constant 0 : index
    %c0_31 = arith.constant 0 : index
    %60 = vector.load %arg8[%c0_30, %c0_31] : memref<216x256xf32, #tpu.memory_space<vmem>>, vector<8x256xf32>
    tpu.vector_store %arg8[%c0_30, %c0_31], %59 {strides = array<i32>} : memref<216x256xf32, #tpu.memory_space<vmem>>, vector<8x256xf32>,
    %c0_32 = arith.constant 0 : index
    %c112 = arith.constant 112 : index
    %61 = vector.load %arg7[%c0_32, %c112] : memref<24x512xf32, #tpu.memory_space<vmem>>, vector<8x256xf32>
    %c8 = arith.constant 8 : index
    %c0_33 = arith.constant 0 : index
    %62 = vector.load %arg8[%c8, %c0_33] : memref<216x256xf32, #tpu.memory_space<vmem>>, vector<8x256xf32>
    tpu.vector_store %arg8[%c8, %c0_33], %61 {strides = array<i32>} : memref<216x256xf32, #tpu.memory_space<vmem>>, vector<8x256xf32>,
    %c0_34 = arith.constant 0 : index
    %c113 = arith.constant 113 : index
    %63 = vector.load %arg7[%c0_34, %c113] : memref<24x512xf32, #tpu.memory_space<vmem>>, vector<8x256xf32>
    %cst_35 = arith.constant 0.000000e+00 : f32
    %64 = vector.broadcast %cst_35 : f32 to vector<8x256xf32>
    %65 = arith.select %46, %63, %64 : vector<8x256xi1>, vector<8x256xf32>
    %c16 = arith.constant 16 : index
    %c0_36 = arith.constant 0 : index
    %66 = vector.load %arg8[%c16, %c0_36] : memref<216x256xf32, #tpu.memory_space<vmem>>, vector<8x256xf32>
    tpu.vector_store %arg8[%c16, %c0_36], %65 {strides = array<i32>} : memref<216x256xf32, #tpu.memory_space<vmem>>, vector<8x256xf32>,
    %c0_37 = arith.constant 0 : index
    %c127 = arith.constant 127 : index
    %67 = vector.load %arg7[%c0_37, %c127] : memref<24x512xf32, #tpu.memory_space<vmem>>, vector<8x256xf32>
    %cst_38 = arith.constant 0.000000e+00 : f32
    %68 = vector.broadcast %cst_38 : f32 to vector<8x256xf32>
    %69 = arith.select %48, %67, %68 : vector<8x256xi1>, vector<8x256xf32>
    %c24 = arith.constant 24 : index
    %c0_39 = arith.constant 0 : index
    %70 = vector.load %arg8[%c24, %c0_39] : memref<216x256xf32, #tpu.memory_space<vmem>>, vector<8x256xf32>
    tpu.vector_store %arg8[%c24, %c0_39], %69 {strides = array<i32>} : memref<216x256xf32, #tpu.memory_space<vmem>>, vector<8x256xf32>,
    %c0_40 = arith.constant 0 : index
    %c128_41 = arith.constant 128 : index
    %71 = vector.load %arg7[%c0_40, %c128_41] : memref<24x512xf32, #tpu.memory_space<vmem>>, vector<8x256xf32>
    %c32 = arith.constant 32 : index
    %c0_42 = arith.constant 0 : index
    %72 = vector.load %arg8[%c32, %c0_42] : memref<216x256xf32, #tpu.memory_space<vmem>>, vector<8x256xf32>
    tpu.vector_store %arg8[%c32, %c0_42], %71 {strides = array<i32>} : memref<216x256xf32, #tpu.memory_space<vmem>>, vector<8x256xf32>,
    %c0_43 = arith.constant 0 : index
    %c129 = arith.constant 129 : index
    %73 = vector.load %arg7[%c0_43, %c129] : memref<24x512xf32, #tpu.memory_space<vmem>>, vector<8x256xf32>
    %cst_44 = arith.constant 0.000000e+00 : f32
    %74 = vector.broadcast %cst_44 : f32 to vector<8x256xf32>
    %75 = arith.select %46, %73, %74 : vector<8x256xi1>, vector<8x256xf32>
    %c40 = arith.constant 40 : index
    %c0_45 = arith.constant 0 : index
    %76 = vector.load %arg8[%c40, %c0_45] : memref<216x256xf32, #tpu.memory_space<vmem>>, vector<8x256xf32>
    tpu.vector_store %arg8[%c40, %c0_45], %75 {strides = array<i32>} : memref<216x256xf32, #tpu.memory_space<vmem>>, vector<8x256xf32>,
    %c0_46 = arith.constant 0 : index
    %c143 = arith.constant 143 : index
    %77 = vector.load %arg7[%c0_46, %c143] : memref<24x512xf32, #tpu.memory_space<vmem>>, vector<8x256xf32>
    %cst_47 = arith.constant 0.000000e+00 : f32
    %78 = vector.broadcast %cst_47 : f32 to vector<8x256xf32>
    %79 = arith.select %48, %77, %78 : vector<8x256xi1>, vector<8x256xf32>
    %c48 = arith.constant 48 : index
    %c0_48 = arith.constant 0 : index
    %80 = vector.load %arg8[%c48, %c0_48] : memref<216x256xf32, #tpu.memory_space<vmem>>, vector<8x256xf32>
    tpu.vector_store %arg8[%c48, %c0_48], %79 {strides = array<i32>} : memref<216x256xf32, #tpu.memory_space<vmem>>, vector<8x256xf32>,
    %c0_49 = arith.constant 0 : index
    %c144 = arith.constant 144 : index
    %81 = vector.load %arg7[%c0_49, %c144] : memref<24x512xf32, #tpu.memory_space<vmem>>, vector<8x256xf32>
    %c56 = arith.constant 56 : index
    %c0_50 = arith.constant 0 : index
    %82 = vector.load %arg8[%c56, %c0_50] : memref<216x256xf32, #tpu.memory_space<vmem>>, vector<8x256xf32>
    tpu.vector_store %arg8[%c56, %c0_50], %81 {strides = array<i32>} : memref<216x256xf32, #tpu.memory_space<vmem>>, vector<8x256xf32>,
    %c0_51 = arith.constant 0 : index
    %c145 = arith.constant 145 : index
    %83 = vector.load %arg7[%c0_51, %c145] : memref<24x512xf32, #tpu.memory_space<vmem>>, vector<8x256xf32>
    %cst_52 = arith.constant 0.000000e+00 : f32
    %84 = vector.broadcast %cst_52 : f32 to vector<8x256xf32>
    %85 = arith.select %46, %83, %84 : vector<8x256xi1>, vector<8x256xf32>
    %c64 = arith.constant 64 : index
    %c0_53 = arith.constant 0 : index
    %86 = vector.load %arg8[%c64, %c0_53] : memref<216x256xf32, #tpu.memory_space<vmem>>, vector<8x256xf32>
    tpu.vector_store %arg8[%c64, %c0_53], %85 {strides = array<i32>} : memref<216x256xf32, #tpu.memory_space<vmem>>, vector<8x256xf32>,
    %c8_54 = arith.constant 8 : index
    %c94 = arith.constant 94 : index
    %87 = vector.load %arg7[%c8_54, %c94] : memref<24x512xf32, #tpu.memory_space<vmem>>, vector<8x256xf32>
    %cst_55 = arith.constant 0.000000e+00 : f32
    %88 = vector.broadcast %cst_55 : f32 to vector<8x256xf32>
    %89 = arith.select %52, %87, %88 : vector<8x256xi1>, vector<8x256xf32>
    %c72 = arith.constant 72 : index
    %c0_56 = arith.constant 0 : index
    %90 = vector.load %arg8[%c72, %c0_56] : memref<216x256xf32, #tpu.memory_space<vmem>>, vector<8x256xf32>
    tpu.vector_store %arg8[%c72, %c0_56], %89 {strides = array<i32>} : memref<216x256xf32, #tpu.memory_space<vmem>>, vector<8x256xf32>,
    %c8_57 = arith.constant 8 : index
    %c96 = arith.constant 96 : index
    %91 = vector.load %arg7[%c8_57, %c96] : memref<24x512xf32, #tpu.memory_space<vmem>>, vector<8x256xf32>
    %c80 = arith.constant 80 : index
    %c0_58 = arith.constant 0 : index
    %92 = vector.load %arg8[%c80, %c0_58] : memref<216x256xf32, #tpu.memory_space<vmem>>, vector<8x256xf32>
    tpu.vector_store %arg8[%c80, %c0_58], %91 {strides = array<i32>} : memref<216x256xf32, #tpu.memory_space<vmem>>, vector<8x256xf32>,
    %c8_59 = arith.constant 8 : index
    %c98 = arith.constant 98 : index
    %93 = vector.load %arg7[%c8_59, %c98] : memref<24x512xf32, #tpu.memory_space<vmem>>, vector<8x256xf32>
    %cst_60 = arith.constant 0.000000e+00 : f32
    %94 = vector.broadcast %cst_60 : f32 to vector<8x256xf32>
    %95 = arith.select %50, %93, %94 : vector<8x256xi1>, vector<8x256xf32>
    %c88 = arith.constant 88 : index
    %c0_61 = arith.constant 0 : index
    %96 = vector.load %arg8[%c88, %c0_61] : memref<216x256xf32, #tpu.memory_space<vmem>>, vector<8x256xf32>
    tpu.vector_store %arg8[%c88, %c0_61], %95 {strides = array<i32>} : memref<216x256xf32, #tpu.memory_space<vmem>>, vector<8x256xf32>,
    %c8_62 = arith.constant 8 : index
    %c126 = arith.constant 126 : index
    %97 = vector.load %arg7[%c8_62, %c126] : memref<24x512xf32, #tpu.memory_space<vmem>>, vector<8x256xf32>
    %cst_63 = arith.constant 0.000000e+00 : f32
    %98 = vector.broadcast %cst_63 : f32 to vector<8x256xf32>
    %99 = arith.select %52, %97, %98 : vector<8x256xi1>, vector<8x256xf32>
    %c96_64 = arith.constant 96 : index
    %c0_65 = arith.constant 0 : index
    %100 = vector.load %arg8[%c96_64, %c0_65] : memref<216x256xf32, #tpu.memory_space<vmem>>, vector<8x256xf32>
    tpu.vector_store %arg8[%c96_64, %c0_65], %99 {strides = array<i32>} : memref<216x256xf32, #tpu.memory_space<vmem>>, vector<8x256xf32>,
    %c8_66 = arith.constant 8 : index
    %c128_67 = arith.constant 128 : index
    %101 = vector.load %arg7[%c8_66, %c128_67] : memref<24x512xf32, #tpu.memory_space<vmem>>, vector<8x256xf32>
    %c104 = arith.constant 104 : index
    %c0_68 = arith.constant 0 : index
    %102 = vector.load %arg8[%c104, %c0_68] : memref<216x256xf32, #tpu.memory_space<vmem>>, vector<8x256xf32>
    tpu.vector_store %arg8[%c104, %c0_68], %101 {strides = array<i32>} : memref<216x256xf32, #tpu.memory_space<vmem>>, vector<8x256xf32>,
    %c8_69 = arith.constant 8 : index
    %c130 = arith.constant 130 : index
    %103 = vector.load %arg7[%c8_69, %c130] : memref<24x512xf32, #tpu.memory_space<vmem>>, vector<8x256xf32>
    %cst_70 = arith.constant 0.000000e+00 : f32
    %104 = vector.broadcast %cst_70 : f32 to vector<8x256xf32>
    %105 = arith.select %50, %103, %104 : vector<8x256xi1>, vector<8x256xf32>
    %c112_71 = arith.constant 112 : index
    %c0_72 = arith.constant 0 : index
    %106 = vector.load %arg8[%c112_71, %c0_72] : memref<216x256xf32, #tpu.memory_space<vmem>>, vector<8x256xf32>
    tpu.vector_store %arg8[%c112_71, %c0_72], %105 {strides = array<i32>} : memref<216x256xf32, #tpu.memory_space<vmem>>, vector<8x256xf32>,
    %c8_73 = arith.constant 8 : index
    %c158 = arith.constant 158 : index
    %107 = vector.load %arg7[%c8_73, %c158] : memref<24x512xf32, #tpu.memory_space<vmem>>, vector<8x256xf32>
    %cst_74 = arith.constant 0.000000e+00 : f32
    %108 = vector.broadcast %cst_74 : f32 to vector<8x256xf32>
    %109 = arith.select %52, %107, %108 : vector<8x256xi1>, vector<8x256xf32>
    %c120 = arith.constant 120 : index
    %c0_75 = arith.constant 0 : index
    %110 = vector.load %arg8[%c120, %c0_75] : memref<216x256xf32, #tpu.memory_space<vmem>>, vector<8x256xf32>
    tpu.vector_store %arg8[%c120, %c0_75], %109 {strides = array<i32>} : memref<216x256xf32, #tpu.memory_space<vmem>>, vector<8x256xf32>,
    %c8_76 = arith.constant 8 : index
    %c160 = arith.constant 160 : index
    %111 = vector.load %arg7[%c8_76, %c160] : memref<24x512xf32, #tpu.memory_space<vmem>>, vector<8x256xf32>
    %c128_77 = arith.constant 128 : index
    %c0_78 = arith.constant 0 : index
    %112 = vector.load %arg8[%c128_77, %c0_78] : memref<216x256xf32, #tpu.memory_space<vmem>>, vector<8x256xf32>
    tpu.vector_store %arg8[%c128_77, %c0_78], %111 {strides = array<i32>} : memref<216x256xf32, #tpu.memory_space<vmem>>, vector<8x256xf32>,
    %c8_79 = arith.constant 8 : index
    %c162 = arith.constant 162 : index
    %113 = vector.load %arg7[%c8_79, %c162] : memref<24x512xf32, #tpu.memory_space<vmem>>, vector<8x256xf32>
    %cst_80 = arith.constant 0.000000e+00 : f32
    %114 = vector.broadcast %cst_80 : f32 to vector<8x256xf32>
    %115 = arith.select %50, %113, %114 : vector<8x256xi1>, vector<8x256xf32>
    %c136 = arith.constant 136 : index
    %c0_81 = arith.constant 0 : index
    %116 = vector.load %arg8[%c136, %c0_81] : memref<216x256xf32, #tpu.memory_space<vmem>>, vector<8x256xf32>
    tpu.vector_store %arg8[%c136, %c0_81], %115 {strides = array<i32>} : memref<216x256xf32, #tpu.memory_space<vmem>>, vector<8x256xf32>,
    %c16_82 = arith.constant 16 : index
    %c77 = arith.constant 77 : index
    %117 = vector.load %arg7[%c16_82, %c77] : memref<24x512xf32, #tpu.memory_space<vmem>>, vector<8x256xf32>
    %cst_83 = arith.constant 0.000000e+00 : f32
    %118 = vector.broadcast %cst_83 : f32 to vector<8x256xf32>
    %119 = arith.select %56, %117, %118 : vector<8x256xi1>, vector<8x256xf32>
    %c144_84 = arith.constant 144 : index
    %c0_85 = arith.constant 0 : index
    %120 = vector.load %arg8[%c144_84, %c0_85] : memref<216x256xf32, #tpu.memory_space<vmem>>, vector<8x256xf32>
    tpu.vector_store %arg8[%c144_84, %c0_85], %119 {strides = array<i32>} : memref<216x256xf32, #tpu.memory_space<vmem>>, vector<8x256xf32>,
    %c16_86 = arith.constant 16 : index
    %c80_87 = arith.constant 80 : index
    %121 = vector.load %arg7[%c16_86, %c80_87] : memref<24x512xf32, #tpu.memory_space<vmem>>, vector<8x256xf32>
    %c152 = arith.constant 152 : index
    %c0_88 = arith.constant 0 : index
    %122 = vector.load %arg8[%c152, %c0_88] : memref<216x256xf32, #tpu.memory_space<vmem>>, vector<8x256xf32>
    tpu.vector_store %arg8[%c152, %c0_88], %121 {strides = array<i32>} : memref<216x256xf32, #tpu.memory_space<vmem>>, vector<8x256xf32>,
    %c16_89 = arith.constant 16 : index
    %c83 = arith.constant 83 : index
    %123 = vector.load %arg7[%c16_89, %c83] : memref<24x512xf32, #tpu.memory_space<vmem>>, vector<8x256xf32>
    %cst_90 = arith.constant 0.000000e+00 : f32
    %124 = vector.broadcast %cst_90 : f32 to vector<8x256xf32>
    %125 = arith.select %54, %123, %124 : vector<8x256xi1>, vector<8x256xf32>
    %c160_91 = arith.constant 160 : index
    %c0_92 = arith.constant 0 : index
    %126 = vector.load %arg8[%c160_91, %c0_92] : memref<216x256xf32, #tpu.memory_space<vmem>>, vector<8x256xf32>
    tpu.vector_store %arg8[%c160_91, %c0_92], %125 {strides = array<i32>} : memref<216x256xf32, #tpu.memory_space<vmem>>, vector<8x256xf32>,
    %c16_93 = arith.constant 16 : index
    %c125 = arith.constant 125 : index
    %127 = vector.load %arg7[%c16_93, %c125] : memref<24x512xf32, #tpu.memory_space<vmem>>, vector<8x256xf32>
    %cst_94 = arith.constant 0.000000e+00 : f32
    %128 = vector.broadcast %cst_94 : f32 to vector<8x256xf32>
    %129 = arith.select %56, %127, %128 : vector<8x256xi1>, vector<8x256xf32>
    %c168 = arith.constant 168 : index
    %c0_95 = arith.constant 0 : index
    %130 = vector.load %arg8[%c168, %c0_95] : memref<216x256xf32, #tpu.memory_space<vmem>>, vector<8x256xf32>
    tpu.vector_store %arg8[%c168, %c0_95], %129 {strides = array<i32>} : memref<216x256xf32, #tpu.memory_space<vmem>>, vector<8x256xf32>,
    %c16_96 = arith.constant 16 : index
    %c128_97 = arith.constant 128 : index
    %131 = vector.load %arg7[%c16_96, %c128_97] : memref<24x512xf32, #tpu.memory_space<vmem>>, vector<8x256xf32>
    %c176 = arith.constant 176 : index
    %c0_98 = arith.constant 0 : index
    %132 = vector.load %arg8[%c176, %c0_98] : memref<216x256xf32, #tpu.memory_space<vmem>>, vector<8x256xf32>
    tpu.vector_store %arg8[%c176, %c0_98], %131 {strides = array<i32>} : memref<216x256xf32, #tpu.memory_space<vmem>>, vector<8x256xf32>,
    %c16_99 = arith.constant 16 : index
    %c131 = arith.constant 131 : index
    %133 = vector.load %arg7[%c16_99, %c131] : memref<24x512xf32, #tpu.memory_space<vmem>>, vector<8x256xf32>
    %cst_100 = arith.constant 0.000000e+00 : f32
    %134 = vector.broadcast %cst_100 : f32 to vector<8x256xf32>
    %135 = arith.select %54, %133, %134 : vector<8x256xi1>, vector<8x256xf32>
    %c184 = arith.constant 184 : index
    %c0_101 = arith.constant 0 : index
    %136 = vector.load %arg8[%c184, %c0_101] : memref<216x256xf32, #tpu.memory_space<vmem>>, vector<8x256xf32>
    tpu.vector_store %arg8[%c184, %c0_101], %135 {strides = array<i32>} : memref<216x256xf32, #tpu.memory_space<vmem>>, vector<8x256xf32>,
    %c16_102 = arith.constant 16 : index
    %c173 = arith.constant 173 : index
    %137 = vector.load %arg7[%c16_102, %c173] : memref<24x512xf32, #tpu.memory_space<vmem>>, vector<8x256xf32>
    %cst_103 = arith.constant 0.000000e+00 : f32
    %138 = vector.broadcast %cst_103 : f32 to vector<8x256xf32>
    %139 = arith.select %56, %137, %138 : vector<8x256xi1>, vector<8x256xf32>
    %c192 = arith.constant 192 : index
    %c0_104 = arith.constant 0 : index
    %140 = vector.load %arg8[%c192, %c0_104] : memref<216x256xf32, #tpu.memory_space<vmem>>, vector<8x256xf32>
    tpu.vector_store %arg8[%c192, %c0_104], %139 {strides = array<i32>} : memref<216x256xf32, #tpu.memory_space<vmem>>, vector<8x256xf32>,
    %c16_105 = arith.constant 16 : index
    %c176_106 = arith.constant 176 : index
    %141 = vector.load %arg7[%c16_105, %c176_106] : memref<24x512xf32, #tpu.memory_space<vmem>>, vector<8x256xf32>
    %c200 = arith.constant 200 : index
    %c0_107 = arith.constant 0 : index
    %142 = vector.load %arg8[%c200, %c0_107] : memref<216x256xf32, #tpu.memory_space<vmem>>, vector<8x256xf32>
    tpu.vector_store %arg8[%c200, %c0_107], %141 {strides = array<i32>} : memref<216x256xf32, #tpu.memory_space<vmem>>, vector<8x256xf32>,
    %c16_108 = arith.constant 16 : index
    %c179 = arith.constant 179 : index
    %143 = vector.load %arg7[%c16_108, %c179] : memref<24x512xf32, #tpu.memory_space<vmem>>, vector<8x256xf32>
    %cst_109 = arith.constant 0.000000e+00 : f32
    %144 = vector.broadcast %cst_109 : f32 to vector<8x256xf32>
    %145 = arith.select %54, %143, %144 : vector<8x256xi1>, vector<8x256xf32>
    %c208 = arith.constant 208 : index
    %c0_110 = arith.constant 0 : index
    %146 = vector.load %arg8[%c208, %c0_110] : memref<216x256xf32, #tpu.memory_space<vmem>>, vector<8x256xf32>
    tpu.vector_store %arg8[%c208, %c0_110], %145 {strides = array<i32>} : memref<216x256xf32, #tpu.memory_space<vmem>>, vector<8x256xf32>,
    %c0_111 = arith.constant 0 : index
    %c0_112 = arith.constant 0 : index
    %147 = vector.load %arg3[%c0_111, %c0_112] : memref<24x216xbf16, #tpu.memory_space<vmem>>, vector<24x216xbf16>
    %c0_113 = arith.constant 0 : index
    %c0_114 = arith.constant 0 : index
    %148 = vector.load %arg8[%c0_113, %c0_114] : memref<216x256xf32, #tpu.memory_space<vmem>>, vector<216x256xf32>
    %149 = arith.truncf %148 : vector<216x256xf32> to vector<216x256xbf16>
    %cst_115 = arith.constant dense<0.000000e+00> : vector<24x256xf32>
    %150 = tpu.matmul %147, %149, %cst_115 {dimension_numbers = #tpu.dot_dimension_numbers<[1], [0], [0], [1], [0, 0, 1, 1], [], []>} : vector<24x216xbf16>, vector<216x256xbf16>, vector<24x256xf32> -> vector<24x256xf32>
    %151 = vector.broadcast %5 : vector<24x1xf32> to vector<24x256xf32>
    %152 = arith.mulf %150, %151 : vector<24x256xf32>
    %153 = vector.broadcast %7 : vector<24x1xf32> to vector<24x256xf32>
    %154 = arith.addf %152, %153 : vector<24x256xf32>
    %c0_116 = arith.constant 0 : index
    %c0_117 = arith.constant 0 : index
    %155 = vector.load %arg4[%c0_116, %c0_117] : memref<24x24xbf16, #tpu.memory_space<vmem>>, vector<24x24xbf16>
    %156 = arith.truncf %154 : vector<24x256xf32> to vector<24x256xbf16>
    %cst_118 = arith.constant dense<0.000000e+00> : vector<24x256xf32>
    %157 = tpu.matmul %155, %156, %cst_118 {dimension_numbers = #tpu.dot_dimension_numbers<[1], [0], [0], [1], [0, 0, 1, 1], [], []>} : vector<24x24xbf16>, vector<24x256xbf16>, vector<24x256xf32> -> vector<24x256xf32>
    %158 = vector.broadcast %9 : vector<24x1xf32> to vector<24x256xf32>
    %159 = arith.mulf %157, %158 : vector<24x256xf32>
    %160 = vector.broadcast %11 : vector<24x1xf32> to vector<24x256xf32>
    %161 = arith.addf %159, %160 : vector<24x256xf32>
    %cst_119 = arith.constant 0.000000e+00 : f32
    %162 = vector.broadcast %cst_119 : f32 to vector<24x256xf32>
    %163 = arith.maximumf %161, %162 : vector<24x256xf32>
    %c0_120 = arith.constant 0 : index
    %c0_121 = arith.constant 0 : index
    %c0_122 = arith.constant 0 : index
    %164 = vector.load %arg6[%c0_120, %c0_121, %c0_122] : memref<1x24x256xf32, #tpu.memory_space<vmem>>, vector<1x24x256xf32>
    %165 = vector.shape_cast %164 : vector<1x24x256xf32> to vector<24x256xf32>
    %166 = vector.shape_cast %163 : vector<24x256xf32> to vector<1x24x256xf32>
    tpu.vector_store %arg6[%c0_120, %c0_121, %c0_122], %166 {strides = array<i32>} : memref<1x24x256xf32, #tpu.memory_space<vmem>>, vector<1x24x256xf32>,
    return
  }
  func.func @transform_0(%arg0: i32) -> (i32, i32, i32) {
    %c0_i32 = arith.constant 0 : i32
    %c0_i32_0 = arith.constant 0 : i32
    %c0_i32_1 = arith.constant 0 : i32
    return %arg0, %c0_i32, %c0_i32_0 : i32, i32, i32
  }
  func.func @transform_1(%arg0: i32) -> (i32, i32) {
    %c0_i32 = arith.constant 0 : i32
    %c0_i32_0 = arith.constant 0 : i32
    %c0_i32_1 = arith.constant 0 : i32
    return %c0_i32, %c0_i32_0 : i32, i32
  }
  func.func @transform_2(%arg0: i32) -> (i32, i32) {
    %c0_i32 = arith.constant 0 : i32
    %c0_i32_0 = arith.constant 0 : i32
    %c0_i32_1 = arith.constant 0 : i32
    return %c0_i32, %c0_i32_0 : i32, i32
  }
  func.func @transform_3(%arg0: i32) -> (i32, i32) {
    %c0_i32 = arith.constant 0 : i32
    %c0_i32_0 = arith.constant 0 : i32
    %c0_i32_1 = arith.constant 0 : i32
    return %c0_i32, %c0_i32_0 : i32, i32
  }
  func.func @transform_4(%arg0: i32) -> (i32, i32, i32) {
    %c0_i32 = arith.constant 0 : i32
    %c0_i32_0 = arith.constant 0 : i32
    %c0_i32_1 = arith.constant 0 : i32
    %c0_i32_2 = arith.constant 0 : i32
    return %c0_i32, %c0_i32_0, %c0_i32_1 : i32, i32, i32
  }
  func.func @transform_5(%arg0: i32) -> (i32, i32, i32) {
    %c0_i32 = arith.constant 0 : i32
    %c0_i32_0 = arith.constant 0 : i32
    %c0_i32_1 = arith.constant 0 : i32
    return %arg0, %c0_i32, %c0_i32_0 : i32, i32, i32
  }
}

</mosaic_0001>

<bundles_post_ra>
// kernel: tpu_custom_call.1
= control target key start
LH: loop header
LB: loop body
LE: loop exit
PB: predicated region body
PF: predicated region fallthrough
CT: control target
= control target key end

     0   :  { %10 = vsyncpa [#allocation5], 0  ;;  %s2269_s0 = inlined_call_operand.vmem [shape: f32[2,24,256], index: 0, kind: input, shape index: {}]   ;;  %s2270_s1 = inlined_call_operand.vmem [shape: bf16[24,24], index: 1, kind: input, shape index: {}]   ;;  %s2271_s2 = inlined_call_operand.vmem [shape: bf16[24,216], index: 2, kind: input, shape index: {}]   ;;  %s2272_s3 = inlined_call_operand.vmem [shape: bf16[24,24], index: 3, kind: input, shape index: {}]   ;;  %s2273_s4 = inlined_call_operand.vmem [shape: f32[6,24,1], index: 4, kind: input, shape index: {}]   ;;  %s2274_s5 = inlined_call_operand.hbm [shape: f32[2,24,256], index: 5, kind: output, shape index: {}]  }
   0x1   :  { %12 = vsyncpa [#allocation5 + $0x1], 0  ;;  %s1792_s18 = smov 0   ;;  %s1794_s19 = smov 0  }
   0x2   :  { %s1796_s20 = smov 0   ;;  %s1798_s21 = smov 0  }
   0x3 LB: > { %s1813_s22 = sadd.s32 4294967295, %s1731_s21   ;;  %s1350_s23 = sadd.s32 4294967294, %s1731_s21   ;;  %s1731_s21 = sphi %s1798_s21, %s2297_s21   ;;  %s1727_s20 = sphi %s1796_s20, %s2296_s20   ;;  %s1723_s19 = sphi %s1794_s19, %s2295_s19   ;;  %s1719_s18 = sphi %s1792_s18, %s2294_s18  }
   0x4   : > { %s1817_s24 = sadd.s32 1, %s1731_s21   ;;  %s135_s25 = sadd.s32 1, %s1727_s20 }
   0x5   : > { %s132_s26 = ssub.s32 %s1731_s21, %s1817_s24  ;;  %p145_p0 = scmp.ne.s32.totalorder %s1727_s20, %s1723_s19 }
   0x6   : > { %p133_p1 = scmp.eq.s32.totalorder %s132_s26, 0  ;;  %p146_p2 = scmp.eq.s32.totalorder %s1813_s22, 1 }
   0x7   : > { %p151_p3 = scmp.ne.s32.totalorder %s1723_s19, %s1719_s18  ;;  %p152_p4 = scmp.eq.s32.totalorder %s1350_s23, 1 }
   0x8   : > { %s1828_s27 = scalar_select %p133_p1, %s1727_s20, %s135_s25  }
   0x9   : > { %p1830_p5 = por %p146_p2, %p145_p0  ;;  %p1834_p6 = por %p152_p4, %p151_p3 }
   0xa   : > { %p1353_p7 = scmp.ge.s32.totalorder %s1731_s21, 1  ;;  %p190_p8 = scmp.lt.s32.totalorder %s1731_s21, 3 }
   0xc   : > { %p191_p9 = pnand %p1353_p7, %p190_p8 }
   0xd   : > { %p218_p10 = scmp.lt.s32.totalorder (!%p191_p9), %s1813_s22, 1  ;;  %v1733_v0 = vmov (!%p191_p9), 0   ;;  %v224_v1 = vld [vmem:[%s2273_s4] sm:$0xff] (!%p191_p9)  ;;  %v1355_v2 = vld [vmem:[%s2273_s4 + $0x18] sm:$0xff] (!%p191_p9)  ;;  %v225_v3 = vld [vmem:[%s2273_s4 + $0x8] sm:$0xff] (!%p191_p9)  ;;  %vm275_vm0 = vcmask (!%p191_p9), 1043456  }
   0xe   : > { %194 = sbr.rel (%p191_p9) target bundleno = 925 (0x39d), region = 40  ;;  %314 = vmatprep.mubr.bf16.mxu0 (!%p191_p9), %v1733_v0  ;;  %1538 = vset.pattern.permute.xlu0 (!%p191_p9), %v1733_v0  ;;  %v1356_v4 = vld [vmem:[%s2273_s4 + $0x20] sm:$0xff] (!%p191_p9)  ;;  %v226_v5 = vld [vmem:[%s2273_s4 + $0x10] sm:$0xff] (!%p191_p9)  ;;  %v1357_v16 = vld [vmem:[%s2273_s4 + $0x28] sm:$0xff] (!%p191_p9)  ;;  %v1734_v19 = vmov (!%p191_p9), 0.0   ;;  %s1735_s8 = smov (!%p191_p9), 17  }
   0xf   : > { %335 = vperm.xlu0 (!%p191_p9), %1538, %v224_v1   ;;  %1539 = vset.pattern.permute.xlu1 (!%p191_p9), %v1733_v0  ;;  %v1660_v18 = vld [vmem:[%s2270_s1] sm:$0xff] (!%p191_p9)   ;;  %vm2276_vm1 = vcmask (!%p191_p9), 195584   ;;  %s2275_s9 = smov (!%p191_p9), 16   ;;  %s1737_s10 = smov (!%p191_p9), 15   ;;  %v1661_v20 = vld [vmem:[%s2270_s1 + $0x8] ss:$0 sps:$4 sm:$0xff] (!%p191_p9)  }
  0x10   : > { %340 = vperm.xlu1 (!%p191_p9), %1539, %v225_v3   ;;  %s1738_s11 = smov (!%p191_p9), 1   ;;  %s1739_s14 = smov (!%p191_p9), 32   ;;  %v1359_v59 = vld [vmem:[%s2273_s4 + $0x38] sm:$0xff] (!%p191_p9)  ;;  %v1664_v60 = vld [vmem:[%s2271_s2 + $0x4] ss:$8 sps:$4 sm:$0xff] (!%p191_p9)   ;;  %vm1036_vm2 = vcmask (!%p191_p9), 719872  }
  0x11   : > { %s1740_s15 = smov (!%p191_p9), 34   ;;  %s1741_s16 = smov (!%p191_p9), 51   ;;  %v1362_v61 = vld [vmem:[%s2273_s4 + $0x50] sm:$0xff] (!%p191_p9)  ;;  %1380 = vmatprep.mubr.msk.bf16.mxu1 (!%p191_p9), %vm1036_vm2, %v1664_v60  ;;  %v1363_v63 = vld [vmem:[%s2273_s4 + $0x58] sm:$0xff] (!%p191_p9)  ;;  %v1361_v3 = vld [vmem:[%s2273_s4 + $0x48] sm:$0xff] (!%p191_p9)  ;;  %vm444_vm3 = vcmask (!%p191_p9), 138240  }
  0x12   : > { %s1743_s23 = smov (!%p191_p9), 2   ;;  %s1744_s25 = smov (!%p191_p9), 48   ;;  %v1358_v1 = vld [vmem:[%s2273_s4 + $0x30] sm:$0xff] (!%p191_p9)  ;;  %vm465_vm5 = vcmask (!%p191_p9), 130048   ;;  %vm505_vm7 = vcmask (!%p191_p9), 7168   ;;  %vm484_vm8 = vcmask (!%p191_p9), 121856  }
  0x13   : > { %356 = vperm.xlu0 (!%p191_p9), %1538, %v1355_v2   ;;  %s1745_s26 = smov (!%p191_p9), 3   ;;  %s1746_s30 = smov (!%p191_p9), 45   ;;  %v1365_v2 = vld [vmem:[%s2273_s4 + $0x68] sm:$0xff] (!%p191_p9)  ;;  %vm1759_vm9 = vmmov (!%p191_p9), 1   ;;  %vm530_vm15 = vcmask (!%p191_p9), 1039360  }
  0x14   : > { %361 = vperm.xlu1 (!%p191_p9), %1539, %v1356_v4   ;;  %s1747_s6 = smov (!%p191_p9), 113   ;;  %s1750_s13 = smov (!%p191_p9), 112  }
  0x15   : > { %s219_s7 = scalar_select %p218_p10, %s1813_s22, 1 }
  0x17   : > { %s1469_s12 = smul.u32 48, %s219_s7  ;;  %345 = vperm.xlu0 %1538, %v226_v5   ;;  %s1748_s7 = smov 127   ;;  %v1367_v5 = vld [vmem:[%s2273_s4 + $0x78] sm:$0xff] }
  0x18   : > { %366 = vperm.xlu1 %1539, %v1357_v16  }
  0x19   : > { %s222_s17 = scalar_lea.vmem %s2269_s0, %s1469_s12  ;;  %s1749_s12 = smov 111  }
  0x1a   : > { %v248_v6 = vld [vmem:[%s222_s17 + $0x8] sm:$0xff]  ;;  %v250_v7 = vld [vmem:[%s222_s17 + $0x18] sm:$0xff]  ;;  %v247_v8 = vld [vmem:[%s222_s17] sm:$0xff] }
  0x1b   : > { %v254_v9 = vpack.c.bf16 %v250_v7, %v248_v6  ;;  %v249_v10 = vld [vmem:[%s222_s17 + $0x10] sm:$0xff]  ;;  %v252_v11 = vld [vmem:[%s222_s17 + $0x28] sm:$0xff]  ;;  %v251_v12 = vld [vmem:[%s222_s17 + $0x20] sm:$0xff]  ;;  %438 = vrot.lane.b32.xlu0 %v1734_v19, %s1735_s8  ;;  %s1742_s17 = smov 30  }
  0x1c   : > { %v253_v13 = vpack.c.bf16 %v249_v10, %v247_v8  ;;  %v256_v14 = vpack.c.bf16 %v252_v11, %v252_v11  ;;  %v255_v15 = vpack.c.bf16 %v251_v12, %v251_v12  ;;  %459 = vrot.lane.b32.xlu1 %v1734_v19, %s2275_s9  ;;  %v1360_v6 = vld [vmem:[%s2273_s4 + $0x40] sm:$0xff]  ;;  %v1366_v11 = vld [vmem:[%s2273_s4 + $0x70] sm:$0xff] }
  0x1d   : > { %282 = vmatprep.subr.bf16.mxu0 %v254_v9  ;;  %v1369_v9 = vld [vmem:[%s2273_s4 + $0x88] sm:$0xff]  ;;  %v1364_v10 = vld [vmem:[%s2273_s4 + $0x60] sm:$0xff] }
  0x1e   : > { %283 = vmatpush1.bf16.msra.mxu0 %v253_v13  ;;  %v277_v17 = vsel %vm275_vm0, %v255_v15, 0 }
  0x1f   : > { %1372 = vmatprep.subr.msk.bf16.mxu0 %vm275_vm0, %v256_v14  ;;  %478 = vrot.lane.b32.xlu0 %v1734_v19, %s1737_s10  ;;  %v1368_v14 = vld [vmem:[%s2273_s4 + $0x80] sm:$0xff] }
  0x20   : > { %499 = vrot.lane.b32.xlu1 %v1734_v19, %s1738_s11 }
  0x22   : > { %285 = vmatpush1.bf16.msra.mxu0 %v277_v17 }
  0x23   : > { %627 = vrot.lane.b32.xlu0 %v1734_v19, %s1739_s14 }
  0x24   : > { %606 = vrot.lane.b32.xlu1 %v1734_v19, %s1740_s15 }
  0x25   : > { %1373 = vmatmul.mubr.msk.bf16.vlgmr.msra.gmra.mrb[0].mxu0 %vm2276_vm1, %v1660_v18 }
  0x26   : > { %324 = vmatprep.mubr.bf16.mxu0 %v1733_v0 }
  0x27   : > { %774 = vrot.lane.b32.xlu0 %v1734_v19, %s1741_s16 }
  0x28   : > { %646 = vrot.lane.b32.xlu1 %v1734_v19, %s1742_s17 }
  0x2b   : > { %814 = vrot.lane.b32.xlu0 %v1734_v19, %s1746_s30 }
  0x2c   : > { %667 = vrot.lane.b32.xlu1 %v1734_v19, %s1743_s23 }
  0x2d   : > { %1374 = vmatmul.mubr.msk.bf16.gmra.mrb[4].mxu0 %vm2276_vm1, %v1661_v20  ;;  %vm740_vm1 = vcmask 785408  }
  0x2e   : > { %1201 = vmatprep.mubr.bf16.mxu0 %v1733_v0 }
  0x30   : > { %795 = vrot.lane.b32.xlu1 %v1734_v19, %s1744_s25 }
  0x34   : > { %835 = vrot.lane.b32.xlu1 %v1734_v19, %s1745_s26 }
  0x8e   : > { %v336_v21 = vpop.permute.xlu0 %335 }
  0x8f   : > { %v341_v37 = vpop.permute.xlu1 %340 }
  0x92   : > { %v357_v25 = vpop.permute.xlu0 %356 }
  0x93   : > { %v362_v40 = vpop.permute.xlu1 %361 }
  0x96   : > { %v346_v48 = vpop.permute.xlu0 %345 }
  0x97   : > { %v367_v52 = vpop.permute.xlu1 %366 }
  0x9a   : > { %v439_v8 = vpop.permute.xlu0 %438 }
  0x9b   : > { %v460_v62 = vpop.permute.xlu1 %459 }
  0x9e   : > { %v479_v13 = vpop.permute.xlu0 %478 }
  0x9f   : > { %v1972_v4 = vpop.permute.xlu1 %499 }
  0xa2   : > { %v1998_v16 = vpop.permute.xlu0 %627 }
  0xa3   : > { %v1980_v7 = vpop.permute.xlu1 %606 }
  0xa6   : > { %v2002_v18 = vpop.permute.xlu0 %774 }
  0xa7   : > { %v1991_v12 = vpop.permute.xlu1 %646 }
  0xab   : > { %v1996_v15 = vpop.permute.xlu1 %667 }
  0xaf   : > { %v2000_v17 = vpop.permute.xlu1 %795 }
  0xb3   : > { %v2004_v20 = vpop.permute.xlu1 %835 }
  0xf8   : > { %v316_v22 = vpop.f32.mrb[0].mxu0 }
  0xf9   : > { %v348_v23 = vmul.f32 %v336_v21, %v316_v22  ;;  %v318_v24 = vpop.f32.mrb[1].mxu0 }
  0xfa   : > { %v349_v26 = vmul.f32 %v336_v21, %v318_v24  ;;  %v320_v27 = vpop.f32.mrb[2].mxu0  ;;  %v2006_v21 = vpop.permute.xlu0 %814 }
  0xfb   : > { %v369_v28 = vadd.f32 %v357_v25, %v348_v23  ;;  %v322_v29 = vpop.f32.mrb[3].mxu0  ;;  %v350_v39 = vmul.f32 %v341_v37, %v320_v27 }
  0xfc   : > { %v370_v31 = vadd.f32 %v357_v25, %v349_v26  ;;  %v351_v41 = vmul.f32 %v341_v37, %v322_v29 }
  0xfd   : > { %v1902_v30 = vmax.f32 %v369_v28, 0.0  ;;  %v371_v42 = vadd.f32 %v362_v40, %v350_v39 }
  0xfe   : > { %v1906_v33 = vmax.f32 %v370_v31, 0.0  ;;  %v372_v44 = vadd.f32 %v362_v40, %v351_v41 }
  0xff   : > { %545 = vrot.lane.b32.xlu0 %v1902_v30, %s1747_s6  ;;  %524 = vrot.lane.b32.xlu1 %v1902_v30, %s1748_s7  ;;  %v1918_v45 = vmax.f32 %v371_v42, 0.0 }
 0x100   : > { %v326_v32 = vpop.f32.mrb[4].mxu0  ;;  %v1545_v38 = vpack.i.bf16 %v1906_v33, %v1902_v30  ;;  %v1570_v43 = vpack.i.bf16 %v1734_v19, %v1906_v33  ;;  %v1921_v46 = vmax.f32 %v372_v44, 0.0 }
 0x101   : > { %v328_v34 = vpop.f32.mrb[5].mxu0  ;;  %v352_v49 = vmul.f32 %v346_v48, %v326_v32 }
 0x102   : > { %v330_v35 = vpop.f32.mrb[6].mxu0  ;;  %v1580_v47 = vpack.i.bf16 %v1921_v46, %v1918_v45  ;;  %v353_v50 = vmul.f32 %v346_v48, %v328_v34  ;;  %v1605_v51 = vpack.i.bf16 %v1734_v19, %v1921_v46 }
 0x103   : > { %585 = vrot.lane.b32.xlu0 %v1902_v30, %s1749_s12  ;;  %566 = vrot.lane.b32.xlu1 %v1902_v30, %s1750_s13  ;;  %v331_v36 = vpop.f32.mrb[7].mxu0  ;;  %v373_v53 = vadd.f32 %v367_v52, %v352_v49 }
 0x104   : > { %v374_v54 = vadd.f32 %v367_v52, %v353_v50 }
 0x105   : > { %v1934_v55 = vmax.f32 %v373_v53, 0.0 }
 0x106   : > { %v1936_v56 = vmax.f32 %v374_v54, 0.0 }
 0x107   : > { %1546 = vrot.lane.b32.xlu1 %v1545_v38, %s2275_s9  ;;  %1541 = vrot.lane.b32.xlu0 %v1545_v38, %s1735_s8  ;;  %s1751_s9 = smov 98   ;;  %s1752_s8 = smov 94  }
 0x108   : > { %v1625_v57 = vpack.i.bf16 %v1936_v56, %v1934_v55  ;;  %v1650_v58 = vpack.i.bf16 %v1734_v19, %v1936_v56 }
 0x10b   : > { %1556 = vrot.lane.b32.xlu1 %v1545_v38, %s1738_s11  ;;  %1551 = vrot.lane.b32.xlu0 %v1545_v38, %s1737_s10  ;;  %s1753_s10 = smov 126   ;;  %s1754_s11 = smov 96  }
 0x10f   : > { %1571 = vrot.lane.b32.xlu1 %v1570_v43, %s1750_s13  ;;  %1561 = vrot.lane.b32.xlu0 %v1570_v43, %s1748_s7 }
 0x113   : > { %1566 = vrot.lane.b32.xlu0 %v1570_v43, %s1747_s6  ;;  %713 = vrot.lane.b32.xlu1 %v1918_v45, %s1751_s9 }
 0x117   : > { %1576 = vrot.lane.b32.xlu0 %v1570_v43, %s1749_s12  ;;  %753 = vrot.lane.b32.xlu1 %v1918_v45, %s1752_s8 }
 0x11b   : > { %692 = vrot.lane.b32.xlu0 %v1918_v45, %s1753_s10  ;;  %1581 = vrot.lane.b32.xlu1 %v1580_v47, %s1740_s15  ;;  %s1755_s15 = smov 125  }
 0x11f   : > { %734 = vrot.lane.b32.xlu0 %v1918_v45, %s1754_s11  ;;  %1591 = vrot.lane.b32.xlu1 %v1580_v47, %s1742_s17  ;;  %s1758_s17 = smov 77  }
 0x123   : > { %1586 = vrot.lane.b32.xlu0 %v1580_v47, %s1739_s14  ;;  %1606 = vrot.lane.b32.xlu1 %v1605_v51, %s1751_s9  ;;  %s1756_s9 = smov 83   ;;  %s1757_s14 = smov 80  }
 0x127   : > { %1596 = vrot.lane.b32.xlu0 %v1580_v47, %s1743_s23  ;;  %1616 = vrot.lane.b32.xlu1 %v1605_v51, %s1752_s8 }
 0x12b   : > { %1601 = vrot.lane.b32.xlu0 %v1605_v51, %s1753_s10  ;;  %860 = vrot.lane.b32.xlu1 %v1934_v55, %s1755_s15 }
 0x12f   : > { %1611 = vrot.lane.b32.xlu0 %v1605_v51, %s1754_s11  ;;  %1626 = vrot.lane.b32.xlu1 %v1625_v57, %s1744_s25  ;;  %s1760_s11 = smov [#allocation4]  }
 0x133   : > { %881 = vrot.lane.b32.xlu0 %v1934_v55, %s1756_s9  ;;  %1636 = vrot.lane.b32.xlu1 %v1625_v57, %s1745_s26  ;;  %s215_s26 = sand.u32 1, %s1723_s19  }
 0x134   : > { %s1468_s6 = smul.u32 48, %s215_s26  ;;  %s2227_s10 = scalar_lea.sflag [#allocation5], %s215_s26 }
 0x137   : > { %902 = vrot.lane.b32.xlu1 %v1934_v55, %s1757_s14  ;;  %1621 = vrot.lane.b32.xlu0 %v1625_v57, %s1741_s16  ;;  %s217_s16 = scalar_lea.vmem [#allocation4], %s1468_s6 }
 0x138   : > { %s1288_s7 = sshll.u32 %s217_s16, 4  ;;  %s2218_s7 = int_to_ptr.vmem [resolvable:$true] %s1288_s7 }
 0x13b   : > { %1651 = vrot.lane.b32.xlu1 %v1650_v58, %s1757_s14  ;;  %1631 = vrot.lane.b32.xlu0 %v1625_v57, %s1746_s30  ;;  %s1470_s30 = smul.u32 768, %s1813_s22  ;;  %s1669_s22 = scalar_lea.vmem %s2218_s7, 768 }
 0x13c   : > { %p1670_p11 = scmp.ne.s32.totalorder %s2218_s7, %s1669_s22 }
 0x13d   : > { %s2223_s8 = scalar_lea.hbm %s2274_s5, %s1470_s30 }
 0x13e   : > { %p1671_p12 = pnand %p1670_p11, %p1830_p5 }
 0x13f   : > { %925 = vrot.lane.b32.xlu1 %v1734_v19, %s1758_s17  ;;  %1641 = vrot.lane.b32.xlu0 %v1650_v58, %s1755_s15  ;;  %v393_v19 = vlaneseq  ;;  %s1673_s15 = sshll.u32 %s1760_s11, 4  ;;  %s1674_s15 = int_to_ptr.vmem [resolvable:$false] %s1673_s15 }
 0x140   : > { %p1672_p13 = pneg %p1671_p12  ;;  %p1676_p0 = scmp.lt.s32.totalorder %s2218_s7, %s1674_s15 }
 0x141   : > { %v394_v22 = vand.u32 127, %v393_v19 }
 0x143   : > { %1107 = vperm.xlu1 %1539, %v1359_v59   ;;  %1646 = vrot.lane.b32.xlu0 %v1650_v58, %s1756_s9  ;;  %v395_v25 = vadd.s32 128, %v394_v22  ;;  %v2016_v29 = vand.u32 15, %v394_v22  ;;  %s1675_s9 = scalar_lea.vmem %s1674_s15, 1536 }
 0x144   : > { %p1677_p1 = scmp.lt.s32.totalorder %s1675_s9, %s1669_s22 }
 0x145   : > { %v2014_v28 = vand.u32 15, %v395_v25  ;;  %vm422_vm6 = vcmp.ge.s32.totalorder %v2016_v29, 1  ;;  %vm420_vm13 = vcmp.lt.s32.totalorder %v2016_v29, 15 }
 0x146   : > { %vm2033_vm12 = vmpackc.low %vm1759_vm9, %vm422_vm6  ;;  %p1678_p2 = por %p1677_p1, %p1676_p0 }
 0x147   : > { %1128 = vperm.xlu1 %1539, %v1362_v61   ;;  %1656 = vrot.lane.b32.xlu0 %v1625_v57, %s1758_s17  ;;  %vm423_vm4 = vcmp.ge.s32.totalorder %v2014_v28, 1  ;;  %vm421_vm11 = vcmp.lt.s32.totalorder %v2014_v28, 15 }
 0x148   : > { %vm2024_vm10 = vmpackc.low %vm1759_vm9, %vm423_vm4  ;;  %p1679_p3 = pnand %p1678_p2, %p1672_p13 }
 0x149   : > { %vm1396_vm14 = vmpackc.low %vm423_vm4, %vm421_vm11 }
 0x14a   : > { %vm1402_vm4 = vmpackc.low %vm421_vm11, %vm1759_vm9 }
 0x14b   : > { %1133 = vperm.xlu1 %1539, %v1363_v63   ;;  %1102 = vperm.xlu0 %1538, %v1358_v1  }
 0x14f   : > { %1227 = vperm.xlu1 %1539, %v1365_v2   ;;  %1123 = vperm.xlu0 %1538, %v1361_v3  }
 0x153   : > { %1243 = vperm.xlu1 %1539, %v1367_v5   ;;  %1112 = vperm.xlu0 %1538, %v1360_v6  }
 0x157   : > { %1253 = vperm.xlu1 %1539, %v1369_v9   ;;  %1222 = vperm.xlu0 %1538, %v1364_v10  }
 0x15b   : > { %1232 = vperm.xlu0 %1538, %v1366_v11  }
 0x15f   : > { %1248 = vperm.xlu0 %1538, %v1368_v14  }
 0x171   : > { %v2008_v23 = vpop.permute.xlu0 %545  ;;  %v525_v24 = vpop.permute.xlu1 %524 }
 0x175   : > { %v2010_v26 = vpop.permute.xlu0 %585  ;;  %v2012_v27 = vpop.permute.xlu1 %566 }
 0x179   : > { %v1547_v31 = vpop.permute.xlu1 %1546  ;;  %v1542_v32 = vpop.permute.xlu0 %1541 }
 0x17a   : > { %v1549_v34 = vunpack.i.h.bf16 %v1547_v31  ;;  %v1548_v35 = vunpack.i.l.bf16 %v1547_v31  ;;  %v1544_v36 = vunpack.i.h.bf16 %v1542_v32  ;;  %v1543_v37 = vunpack.i.l.bf16 %v1542_v32 }
 0x17c   : > { %v446_v38 = vsel %vm444_vm3, %v1543_v37, %v1544_v36  ;;  %v467_v39 = vsel %vm465_vm5, %v1548_v35, %v1549_v34  ;;  %v445_v41 = vsel %vm444_vm3, %v439_v8, %v1543_v37  ;;  %v466_v42 = vsel %vm465_vm5, %v460_v62, %v1548_v35  ;;  %vm1399_vm3 = vmpackc.low %vm422_vm6, %vm420_vm13 }
 0x17d   : > { %v1557_v43 = vpop.permute.xlu1 %1556  ;;  %v1552_v44 = vpop.permute.xlu0 %1551  ;;  %v1391_v47 = vpack.c.bf16 %v467_v39, %v446_v38  ;;  %v1394_v49 = vpack.c.bf16 %v466_v42, %v445_v41  ;;  %vm572_vm5 = vcmask 916480   ;;  %vm1405_vm6 = vmpackc.low %vm420_vm13, %vm1759_vm9 }
 0x17e   : > { %v1559_v50 = vunpack.i.h.bf16 %v1557_v43  ;;  %v1558_v51 = vunpack.i.l.bf16 %v1557_v43  ;;  %v1554_v52 = vunpack.i.h.bf16 %v1552_v44  ;;  %v1553_v53 = vunpack.i.l.bf16 %v1552_v44 }
 0x17f   : > { %1392 = vmatprep.subr.msk.bf16.mxu1 %vm2024_vm10, %v1391_v47 }
 0x180   : > { %v506_v54 = vsel %vm505_vm7, %v1972_v4, %v1558_v51  ;;  %v507_v57 = vsel %vm505_vm7, %v1558_v51, %v1559_v50  ;;  %v485_v58 = vsel %vm484_vm8, %v479_v13, %v1553_v53  ;;  %v486_v59 = vsel %vm484_vm8, %v1553_v53, %v1554_v52  ;;  %1395 = vmatpush1.bf16.msk.msra.mxu1 %vm2033_vm12, %v1394_v49 }
 0x181   : > { %v1397_v60 = vpack.c.bf16 %v507_v57, %v486_v59  ;;  %v1400_v61 = vpack.c.bf16 %v506_v54, %v485_v58  ;;  %v1572_v62 = vpop.permute.xlu1 %1571  ;;  %v1562_v63 = vpop.permute.xlu0 %1561  ;;  %vm551_vm7 = vcmask 924672   ;;  %vm591_vm8 = vcmask 908288  }
 0x182   : > { %v1564_v1 = vunpack.i.h.bf16 %v1562_v63  ;;  %v1563_v2 = vunpack.i.l.bf16 %v1562_v63  ;;  %v1574_v3 = vunpack.i.h.bf16 %v1572_v62  ;;  %v1573_v4 = vunpack.i.l.bf16 %v1572_v62 }
 0x183   : > { %1398 = vmatprep.subr.msk.bf16.mxu1 %vm1396_vm14, %v1397_v60  ;;  %vm612_vm14 = vcmask 277504  }
 0x184   : > { %v531_v5 = vsel %vm530_vm15, %v525_v24, %v1563_v2  ;;  %v532_v6 = vsel %vm530_vm15, %v1563_v2, %v1564_v1  ;;  %1401 = vmatpush1.bf16.msk.msra.mxu1 %vm1399_vm3, %v1400_v61  ;;  %v573_v19 = vsel %vm572_vm5, %v2012_v27, %v1573_v4  ;;  %v574_v22 = vsel %vm572_vm5, %v1573_v4, %v1574_v3 }
 0x185   : > { %v1403_v8 = vpack.c.bf16 %v532_v6, %v1906_v33  ;;  %v1406_v9 = vpack.c.bf16 %v531_v5, %v1902_v30  ;;  %v1567_v10 = vpop.permute.xlu0 %1566  ;;  %v2060_v11 = vpop.permute.xlu1 %713  ;;  %vm427_vm15 = vcmp.ge.s32.totalorder %v2014_v28, 2  ;;  %vm426_vm3 = vcmp.ge.s32.totalorder %v2016_v29, 2 }
 0x186   : > { %v1569_v13 = vunpack.i.h.bf16 %v1567_v10  ;;  %v1568_v14 = vunpack.i.l.bf16 %v1567_v10  ;;  %vm633_vm5 = vcmask 261120  }
 0x187   : > { %1404 = vmatprep.subr.msk.bf16.mxu1 %vm1402_vm4, %v1403_v8  ;;  %vm652_vm4 = vcmask 244736  }
 0x188   : > { %v552_v24 = vsel %vm551_vm7, %v2008_v23, %v1568_v14  ;;  %v553_v25 = vsel %vm551_vm7, %v1568_v14, %v1569_v13  ;;  %1407 = vmatpush1.bf16.msk.msra.mxu1 %vm1405_vm6, %v1406_v9  ;;  %vm424_vm7 = vcmp.lt.s32.totalorder %v2016_v29, 14  ;;  %vm673_vm6 = vcmask 15360  }
 0x189   : > { %v1409_v33 = vpack.c.bf16 %v574_v22, %v553_v25  ;;  %v1412_v30 = vpack.c.bf16 %v573_v19, %v552_v24  ;;  %v1577_v31 = vpop.permute.xlu0 %1576  ;;  %v2067_v32 = vpop.permute.xlu1 %753 }
 0x18a   : > { %v1579_v34 = vunpack.i.h.bf16 %v1577_v31  ;;  %v1578_v35 = vunpack.i.l.bf16 %v1577_v31 }
 0x18b   : > { %1410 = vmatprep.subr.msk.bf16.mxu1 %vm2024_vm10, %v1409_v33  ;;  %vm1414_vm10 = vmpackc.low %vm427_vm15, %vm421_vm11  ;;  %vm425_vm11 = vcmp.lt.s32.totalorder %v2014_v28, 14 }
 0x18c   : > { %1413 = vmatpush1.bf16.msk.msra.mxu1 %vm2033_vm12, %v1412_v30  ;;  %v592_v38 = vsel %vm591_vm8, %v2010_v26, %v1578_v35  ;;  %v593_v39 = vsel %vm591_vm8, %v1578_v35, %v1579_v34  ;;  %vm1417_vm12 = vmpackc.low %vm426_vm3, %vm420_vm13 }
 0x18d   : > { %v2073_v27 = vpop.permute.xlu0 %692  ;;  %v1582_v23 = vpop.permute.xlu1 %1581  ;;  %vm2096_vm13 = vmpackc.low %vm425_vm11, %vm1759_vm9 }
 0x18e   : > { %v1584_v36 = vunpack.i.h.bf16 %v1582_v23  ;;  %v1583_v37 = vunpack.i.l.bf16 %v1582_v23  ;;  %vm2103_vm8 = vmpackc.low %vm424_vm7, %vm1759_vm9 }
 0x190   : > { %v613_v40 = vsel %vm612_vm14, %v1980_v7, %v1583_v37  ;;  %v614_v41 = vsel %vm612_vm14, %v1583_v37, %v1584_v36  ;;  %vm719_vm14 = vcmask 801792  }
 0x191   : > { %v1415_v42 = vpack.c.bf16 %v614_v41, %v593_v39  ;;  %v1418_v43 = vpack.c.bf16 %v613_v40, %v592_v38  ;;  %v2083_v44 = vpop.permute.xlu0 %734  ;;  %v1592_v47 = vpop.permute.xlu1 %1591 }
 0x192   : > { %v1594_v26 = vunpack.i.h.bf16 %v1592_v47  ;;  %v1593_v48 = vunpack.i.l.bf16 %v1592_v47 }
 0x193   : > { %1416 = vmatprep.subr.msk.bf16.mxu1 %vm1414_vm10, %v1415_v42  ;;  %vm1426_vm10 = vmpackc.low %vm1759_vm9, %vm427_vm15 }
 0x194   : > { %1419 = vmatpush1.bf16.msk.msra.mxu1 %vm1417_vm12, %v1418_v43  ;;  %v653_v52 = vsel %vm652_vm4, %v1991_v12, %v1593_v48  ;;  %v654_v53 = vsel %vm652_vm4, %v1593_v48, %v1594_v26  ;;  %vm698_vm12 = vcmask 1031168   ;;  %vm1429_vm4 = vmpackc.low %vm1759_vm9, %vm426_vm3 }
 0x195   : > { %v1587_v7 = vpop.permute.xlu0 %1586  ;;  %v1607_v49 = vpop.permute.xlu1 %1606 }
 0x196   : > { %v1589_v50 = vunpack.i.h.bf16 %v1587_v7  ;;  %v1588_v51 = vunpack.i.l.bf16 %v1587_v7  ;;  %v1609_v1 = vunpack.i.h.bf16 %v1607_v49  ;;  %v1608_v2 = vunpack.i.l.bf16 %v1607_v49 }
 0x198   : > { %v634_v54 = vsel %vm633_vm5, %v1998_v16, %v1588_v51  ;;  %v635_v57 = vsel %vm633_vm5, %v1588_v51, %v1589_v50  ;;  %v720_v13 = vsel %vm719_vm14, %v2060_v11, %v1608_v2  ;;  %v721_v14 = vsel %vm719_vm14, %v1608_v2, %v1609_v1  ;;  %vm1432_vm5 = vmpackc.low %vm427_vm15, %vm425_vm11 }
 0x199   : > { %v1421_v59 = vpack.c.bf16 %v654_v53, %v635_v57  ;;  %v1424_v60 = vpack.c.bf16 %v653_v52, %v634_v54  ;;  %v1597_v61 = vpop.permute.xlu0 %1596  ;;  %v1617_v62 = vpop.permute.xlu1 %1616  ;;  %vm1435_vm14 = vmpackc.low %vm426_vm3, %vm424_vm7  ;;  %vm801_vm15 = vcmask 392192   ;;  %vm780_vm3 = vcmask 416768  }
 0x19a   : > { %v1599_v16 = vunpack.i.h.bf16 %v1597_v61  ;;  %v1598_v63 = vunpack.i.l.bf16 %v1597_v61  ;;  %v1619_v19 = vunpack.i.h.bf16 %v1617_v62  ;;  %v1618_v22 = vunpack.i.l.bf16 %v1617_v62 }
 0x19b   : > { %1422 = vmatprep.subr.msk.bf16.mxu1 %vm2096_vm13, %v1421_v59  ;;  %vm431_vm11 = vcmp.ge.s32.totalorder %v2014_v28, 3  ;;  %vm841_vm7 = vcmask 23552  }
 0x19c   : > { %v674_v3 = vsel %vm673_vm6, %v1996_v15, %v1598_v63  ;;  %v675_v4 = vsel %vm673_vm6, %v1598_v63, %v1599_v16  ;;  %1425 = vmatpush1.bf16.msk.msra.mxu1 %vm2103_vm8, %v1424_v60  ;;  %vm759_vm6 = vcmask 769024  }
 0x19d   : > { %v1427_v5 = vpack.c.bf16 %v1921_v46, %v675_v4  ;;  %v1430_v6 = vpack.c.bf16 %v1918_v45, %v674_v3  ;;  %v1602_v8 = vpop.permute.xlu0 %1601  ;;  %v2117_v9 = vpop.permute.xlu1 %860  ;;  %v760_v34 = vsel %vm759_vm6, %v2067_v32, %v1618_v22  ;;  %v761_v35 = vsel %vm759_vm6, %v1618_v22, %v1619_v19 }
 0x19e   : > { %v1604_v15 = vunpack.i.h.bf16 %v1602_v8  ;;  %v1603_v10 = vunpack.i.l.bf16 %v1602_v8  ;;  %vm866_vm6 = vcmask 1022976  }
 0x19f   : > { %1428 = vmatprep.subr.msk.bf16.mxu1 %vm1426_vm10, %v1427_v5 }
 0x1a0   : > { %v699_v46 = vsel %vm698_vm12, %v2073_v27, %v1603_v10  ;;  %v700_v24 = vsel %vm698_vm12, %v1603_v10, %v1604_v15  ;;  %1431 = vmatpush1.bf16.msk.msra.mxu1 %vm1429_vm4, %v1430_v6  ;;  %vm429_vm12 = vcmp.lt.s32.totalorder %v2014_v28, 13  ;;  %vm428_vm4 = vcmp.lt.s32.totalorder %v2016_v29, 13 }
 0x1a1   : > { %v1433_v45 = vpack.c.bf16 %v721_v14, %v700_v24  ;;  %v1436_v25 = vpack.c.bf16 %v720_v13, %v699_v46  ;;  %v1612_v33 = vpop.permute.xlu0 %1611  ;;  %v1627_v30 = vpop.permute.xlu1 %1626 }
 0x1a2   : > { %v1614_v11 = vunpack.i.h.bf16 %v1612_v33  ;;  %v1613_v31 = vunpack.i.l.bf16 %v1612_v33  ;;  %v1629_v40 = vunpack.i.h.bf16 %v1627_v30  ;;  %v1628_v41 = vunpack.i.l.bf16 %v1627_v30 }
 0x1a3   : > { %1434 = vmatprep.subr.msk.bf16.mxu1 %vm1432_vm5, %v1433_v45  ;;  %vm1450_vm5 = vmpackc.low %vm431_vm11, %vm429_vm12 }
 0x1a4   : > { %v741_v27 = vsel %vm740_vm1, %v2083_v44, %v1613_v31  ;;  %v742_v23 = vsel %vm740_vm1, %v1613_v31, %v1614_v11  ;;  %1437 = vmatpush1.bf16.msk.msra.mxu1 %vm1435_vm14, %v1436_v25  ;;  %vm430_vm1 = vcmp.ge.s32.totalorder %v2016_v29, 3  ;;  %v802_v44 = vsel %vm801_vm15, %v2000_v17, %v1628_v41 }
 0x1a5   : > { %v1439_v36 = vpack.c.bf16 %v761_v35, %v742_v23  ;;  %v1442_v37 = vpack.c.bf16 %v760_v34, %v741_v27  ;;  %v2134_v38 = vpop.permute.xlu0 %881  ;;  %v1637_v39 = vpop.permute.xlu1 %1636  ;;  %v803_v47 = vsel %vm801_vm15, %v1628_v41, %v1629_v40  ;;  %vm2154_vm10 = vmpackc.low %vm1759_vm9, %vm430_vm1  ;;  %v938_v35 = vld [vmem:[%s2271_s2 + $0x10] sm:$0xff]  ;;  %v1662_v23 = vld [vmem:[%s2271_s2] ss:$8 sps:$4 sm:$0xff]  }
 0x1a6   : > { %v1639_v48 = vunpack.i.h.bf16 %v1637_v39  ;;  %v1638_v7 = vunpack.i.l.bf16 %v1637_v39  ;;  %vm1453_vm14 = vmpackc.low %vm430_vm1, %vm428_vm4  ;;  %v1378_v28 = vcombine.high %v938_v35, %v938_v35  ;;  %v1377_v29 = vcombine.low %v938_v35, %v938_v35 }
 0x1a7   : > { %1440 = vmatprep.subr.msk.bf16.mxu1 %vm2096_vm13, %v1439_v36  ;;  %vm2147_vm13 = vmpackc.low %vm1759_vm9, %vm431_vm11  ;;  %vm887_vm11 = vcmask 678912  }
 0x1a8   : > { %1443 = vmatpush1.bf16.msk.msra.mxu1 %vm2103_vm8, %v1442_v37  ;;  %vm820_vm8 = vcmask 367616   ;;  %v842_v58 = vsel %vm841_vm7, %v2004_v20, %v1638_v7  ;;  %v843_v59 = vsel %vm841_vm7, %v1638_v7, %v1639_v48  ;;  %vm1456_vm15 = vmpackc.low %vm429_vm12, %vm1759_vm9  ;;  %vm927_vm7 = vcmask 629760  }
 0x1a9   : > { %v1622_v32 = vpop.permute.xlu0 %1621  ;;  %v903_v26 = vpop.permute.xlu1 %902  ;;  %vm1459_vm1 = vmpackc.low %vm428_vm4, %vm1759_vm9 }
 0x1aa   : > { %v1624_v42 = vunpack.i.h.bf16 %v1622_v32  ;;  %v1623_v43 = vunpack.i.l.bf16 %v1622_v32 }
 0x1ac   : > { %v781_v49 = vsel %vm780_vm3, %v2002_v18, %v1623_v43  ;;  %v782_v50 = vsel %vm780_vm3, %v1623_v43, %v1624_v42  ;;  %vm908_vm3 = vcmask 654336  }
 0x1ad   : > { %v1445_v52 = vpack.c.bf16 %v803_v47, %v782_v50  ;;  %v1448_v53 = vpack.c.bf16 %v802_v44, %v781_v49  ;;  %v1632_v54 = vpop.permute.xlu0 %1631  ;;  %v1652_v62 = vpop.permute.xlu1 %1651 }
 0x1ae   : > { %v1634_v18 = vunpack.i.h.bf16 %v1632_v54  ;;  %v1633_v57 = vunpack.i.l.bf16 %v1632_v54  ;;  %v1654_v1 = vunpack.i.h.bf16 %v1652_v62  ;;  %v1653_v2 = vunpack.i.l.bf16 %v1652_v62 }
 0x1af   : > { %1446 = vmatprep.subr.msk.bf16.mxu1 %vm2147_vm13, %v1445_v52 }
 0x1b0   : > { %v821_v60 = vsel %vm820_vm8, %v2006_v21, %v1633_v57  ;;  %v822_v61 = vsel %vm820_vm8, %v1633_v57, %v1634_v18  ;;  %1449 = vmatpush1.bf16.msk.msra.mxu1 %vm2154_vm10, %v1448_v53  ;;  %v910_v13 = vsel %vm908_vm3, %v1653_v2, %v1654_v1 }
 0x1b1   : > { %v1451_v12 = vpack.c.bf16 %v843_v59, %v822_v61  ;;  %v1454_v16 = vpack.c.bf16 %v842_v58, %v821_v60  ;;  %v1642_v63 = vpop.permute.xlu0 %1641 }
 0x1b2   : > { %v1644_v20 = vunpack.i.h.bf16 %v1642_v63  ;;  %v1643_v21 = vunpack.i.l.bf16 %v1642_v63 }
 0x1b3   : > { %1452 = vmatprep.subr.msk.bf16.mxu1 %vm1450_vm5, %v1451_v12 }
 0x1b4   : > { %v867_v3 = vsel %vm866_vm6, %v2117_v9, %v1643_v21  ;;  %v868_v4 = vsel %vm866_vm6, %v1643_v21, %v1644_v20  ;;  %1455 = vmatpush1.bf16.msk.msra.mxu1 %vm1453_vm14, %v1454_v16  ;;  %v909_v9 = vsel %vm908_vm3, %v903_v26, %v1653_v2  ;;  %v1667_v20 = vld [vmem:[%s2272_s3] sm:$0xff]   ;;  %v1668_v21 = vld [vmem:[%s2272_s3 + $0x8] ss:$0 sps:$4 sm:$0xff]  }
 0x1b5   : > { %v1457_v5 = vpack.c.bf16 %v868_v4, %v1936_v56  ;;  %v1460_v6 = vpack.c.bf16 %v867_v3, %v1934_v55  ;;  %v1647_v8 = vpop.permute.xlu0 %1646  ;;  %v926_v55 = vpop.permute.xlu1 %925 }
 0x1b6   : > { %v1649_v15 = vunpack.i.h.bf16 %v1647_v8  ;;  %v1648_v10 = vunpack.i.l.bf16 %v1647_v8 }
 0x1b7   : > { %1458 = vmatprep.subr.msk.bf16.mxu1 %vm1456_vm15, %v1457_v5 }
 0x1b8   : > { %v888_v14 = vsel %vm887_vm11, %v2134_v38, %v1648_v10  ;;  %v889_v19 = vsel %vm887_vm11, %v1648_v10, %v1649_v15  ;;  %1461 = vmatpush1.bf16.msk.msra.mxu1 %vm1459_vm1, %v1460_v6 }
 0x1b9   : > { %v1463_v22 = vpack.c.bf16 %v910_v13, %v889_v19  ;;  %v1466_v46 = vpack.c.bf16 %v909_v9, %v888_v14  ;;  %v1657_v56 = vpop.permute.xlu0 %1656 }
 0x1ba   : > { %v1659_v24 = vunpack.i.h.bf16 %v1657_v56  ;;  %v1658_v45 = vunpack.i.l.bf16 %v1657_v56 }
 0x1bb   : > { %1464 = vmatprep.subr.msk.bf16.mxu1 %vm2147_vm13, %v1463_v22 }
 0x1bc   : > { %v929_v25 = vsel %vm927_vm7, %v1659_v24, %v926_v55  ;;  %1467 = vmatpush1.bf16.msk.msra.mxu1 %vm2154_vm10, %v1466_v46  ;;  %v928_v33 = vsel %vm927_vm7, %v1658_v45, %v1659_v24 }
 0x1bd   : > { %v933_v30 = vsel %vm429_vm12, %v929_v25, 0.0  ;;  %v932_v11 = vsel %vm428_vm4, %v928_v33, 0.0 }
 0x1be   : > { %v1020_v31 = vpack.c.bf16 %v933_v30, %v933_v30  ;;  %v1019_v34 = vpack.c.bf16 %v932_v11, %v932_v11 }
 0x1c0   : > { %1379 = vmatprep.subr.msk.bf16.mxu1 %vm275_vm0, %v1020_v31  ;;  %v1044_v27 = vsel %vm275_vm0, %v1019_v34, 0 }
 0x1c1   : > { %1076 = vmatpush1.bf16.msra.mxu1 %v1044_v27 }
 0x1c2   : > { %v1108_v37 = vpop.permute.xlu1 %1107 }
 0x1c4   : > { %1082 = vmatmul.mubr.bf16.vlgmr.msra.gmra.mrb[0].mxu1 %v1662_v23 }
 0x1c5   : > { %1381 = vmatprep.mubr.msk.bf16.mxu1 %vm1036_vm2, %v1378_v28  ;;  %vm2291_vm2 = vcmask 195584  }
 0x1c6   : > { %v1129_v47 = vpop.permute.xlu1 %1128  ;;  %vm2292_vm9 = vmmov %vm2291_vm2 }
 0x1ca   : > { %v1103_v36 = vpop.permute.xlu0 %1102  ;;  %v1134_v57 = vpop.permute.xlu1 %1133 }
 0x1cc   : > { %1092 = vmatmul.mubr.bf16.gmra.mrb[4].mxu1 %v1377_v29 }
 0x1ce   : > { %v1124_v41 = vpop.permute.xlu0 %1123  ;;  %v1228_v2 = vpop.permute.xlu1 %1227 }
 0x1d2   : > { %v1113_v52 = vpop.permute.xlu0 %1112  ;;  %v1244_v8 = vpop.permute.xlu1 %1243 }
 0x1d6   : > { %v1223_v1 = vpop.permute.xlu0 %1222  ;;  %v1254_v31 = vpop.permute.xlu1 %1253 }
 0x1da   : > { %v1233_v3 = vpop.permute.xlu0 %1232 }
 0x1de   : > { %v1249_v14 = vpop.permute.xlu0 %1248 }
 0x297   : > { %v1083_v38 = vpop.f32.mrb[0].mxu1 }
 0x298   : > { %v1115_v39 = vmul.f32 %v1103_v36, %v1083_v38  ;;  %v1085_v40 = vpop.f32.mrb[1].mxu1 }
 0x299   : > { %v1116_v32 = vmul.f32 %v1103_v36, %v1085_v40  ;;  %v1087_v42 = vpop.f32.mrb[2].mxu1 }
 0x29a   : > { %v1117_v43 = vmul.f32 %v1108_v37, %v1087_v42  ;;  %v1089_v44 = vpop.f32.mrb[3].mxu1  ;;  %v1136_v48 = vadd.f32 %v1124_v41, %v1115_v39 }
 0x29b   : > { %v1118_v26 = vmul.f32 %v1108_v37, %v1089_v44  ;;  %v1137_v49 = vadd.f32 %v1124_v41, %v1116_v32 }
 0x29c   : > { %v1138_v7 = vadd.f32 %v1129_v47, %v1117_v43 }
 0x29d   : > { %v1139_v50 = vadd.f32 %v1129_v47, %v1118_v26 }
 0x29e   : > { %v1145_v51 = vpack.c.bf16 %v1138_v7, %v1136_v48 }
 0x29f   : > { %v1093_v53 = vpop.f32.mrb[4].mxu1  ;;  %v1146_v54 = vpack.c.bf16 %v1139_v50, %v1137_v49 }
 0x2a0   : > { %v1119_v17 = vmul.f32 %v1113_v52, %v1093_v53  ;;  %v1095_v18 = vpop.f32.mrb[5].mxu1 }
 0x2a1   : > { %v1120_v58 = vmul.f32 %v1113_v52, %v1095_v18  ;;  %v1097_v59 = vpop.f32.mrb[6].mxu1  ;;  %1169 = vmatprep.subr.bf16.mxu0 %v1146_v54 }
 0x2a2   : > { %v1140_v60 = vadd.f32 %v1134_v57, %v1119_v17  ;;  %v1098_v61 = vpop.f32.mrb[7].mxu1  ;;  %1170 = vmatpush1.bf16.msra.mxu0 %v1145_v51 }
 0x2a3   : > { %v1141_v62 = vadd.f32 %v1134_v57, %v1120_v58 }
 0x2a4   : > { %v1147_v12 = vpack.c.bf16 %v1140_v60, %v1140_v60 }
 0x2a5   : > { %v1148_v16 = vpack.c.bf16 %v1141_v62, %v1141_v62 }
 0x2a6   : > { %v1164_v63 = vsel %vm275_vm0, %v1147_v12, 0 }
 0x2a7   : > { %1384 = vmatprep.subr.msk.bf16.mxu0 %vm275_vm0, %v1148_v16 }
 0x2a8   : > { %1172 = vmatpush1.bf16.msra.mxu0 %v1164_v63 }
 0x2ab   : > { %1385 = vmatmul.mubr.msk.bf16.vlgmr.msra.gmra.mrb[8].mxu0 %vm2291_vm2, %v1667_v20 }
 0x2ac   : > { %1211 = vmatprep.mubr.bf16.mxu0 %v1733_v0 }
 0x2b3   : > { %1386 = vmatmul.mubr.msk.bf16.gmra.mrb[12].mxu0 %vm2292_vm9, %v1668_v21 }
 0x37e   : > { %v1203_v4 = vpop.f32.mrb[8].mxu0 }
 0x37f   : > { %v1235_v5 = vmul.f32 %v1223_v1, %v1203_v4  ;;  %v1205_v6 = vpop.f32.mrb[9].mxu0 }
 0x380   : > { %v1236_v15 = vmul.f32 %v1223_v1, %v1205_v6  ;;  %v1207_v10 = vpop.f32.mrb[10].mxu0 }
 0x381   : > { %v1256_v9 = vadd.f32 %v1244_v8, %v1235_v5  ;;  %v1237_v0 = vmul.f32 %v1228_v2, %v1207_v10  ;;  %v1209_v13 = vpop.f32.mrb[11].mxu0 }
 0x382   : > { %v1257_v19 = vadd.f32 %v1244_v8, %v1236_v15  ;;  %v1238_v22 = vmul.f32 %v1228_v2, %v1209_v13 }
 0x383   : > { %v1262_v46 = vmax.f32 %v1256_v9, 0.0  ;;  %v1258_v56 = vadd.f32 %v1249_v14, %v1237_v0 }
 0x384   : > { %v1263_v55 = vmax.f32 %v1257_v19, 0.0  ;;  %v1259_v24 = vadd.f32 %v1249_v14, %v1238_v22 }
 0x385   : > { %1268 = vst [vmem:[%s217_s16] sm:$0xff] %v1262_v46  ;;  %v1264_v45 = vmax.f32 %v1258_v56, 0.0 }
 0x386   : > { %1269 = vst [vmem:[%s217_s16 + $0x8] sm:$0xff] %v1263_v55  ;;  %v1265_v25 = vmax.f32 %v1259_v24, 0.0  ;;  %v1213_v33 = vpop.f32.mrb[12].mxu0 }
 0x387   : > { %1270 = vst [vmem:[%s217_s16 + $0x10] sm:$0xff] %v1264_v45  ;;  %v1239_v30 = vmul.f32 %v1233_v3, %v1213_v33  ;;  %v1215_v11 = vpop.f32.mrb[13].mxu0 }
 0x388   : > { %1271 = vst [vmem:[%s217_s16 + $0x18] sm:$0xff] %v1265_v25  ;;  %v1240_v34 = vmul.f32 %v1233_v3, %v1215_v11  ;;  %v1217_v35 = vpop.f32.mrb[14].mxu0 }
 0x389   : > { %v1260_v27 = vadd.f32 %v1254_v31, %v1239_v30  ;;  %v1218_v23 = vpop.f32.mrb[15].mxu0 }
 0x38a   : > { %v1261_v28 = vadd.f32 %v1254_v31, %v1240_v34 }
 0x38b   : > { %v1266_v29 = vmax.f32 %v1260_v27, 0.0 }
 0x38c   : > { %v1267_v36 = vmax.f32 %v1261_v28, 0.0 }
 0x38d   : > { %1272 = vst [vmem:[%s217_s16 + $0x20] sm:$0xff] %v1266_v29 }
 0x38e   : > { %1273 = vst [vmem:[%s217_s16 + $0x28] sm:$0xff] %v1267_v36 }
 0x38f   : > { %1682 = shalt.err (!%p1679_p3)
}
 0x390   : > { %s1683_s14 = scalar_lea.hbm %s2223_s8, 768  ;;  %s1687_s25 = scalar_lea.hbm %s2274_s5, 1536 }
 0x391   : > { %p1684_p4 = scmp.ne.s32.totalorder %s2223_s8, %s1683_s14  ;;  %p1688_p9 = scmp.lt.u32.totalorder %s2223_s8, %s2274_s5 }
 0x392   : > { %p1689_p10 = scmp.lt.u32.totalorder %s1687_s25, %s1683_s14  ;;  %p1691_p12 = scmp.lt.u32.totalorder %s1683_s14, %s2223_s8 }
 0x393   : > { %p1685_p7 = pnand %p1684_p4, %p1830_p5 }
 0x394   : > { %p1690_p11 = por %p1689_p10, %p1688_p9 }
 0x395   : > { %p1686_p8 = pneg %p1685_p7 }
 0x396   : > { %p1692_p13 = por %p1691_p12, %p1690_p11 }
 0x398   : > { %p1693_p0 = pnand %p1692_p13, %p1686_p8 }
 0x39a   : > { %1696 = shalt.err (!%p1693_p0)
}
 0x39b   : > { %s1761_s16 = smov 256   ;;  %s2293_s30 = smov 16  }
 0x39c   : > { %1471 = dma.vmem_to_hbm [thread:$0]  (%p1830_p5), %s2218_s7, 768, %s2223_s8, %s2227_s10, %s1761_s16, %s1761_s16, %s2293_s30  }
 0x39d PF: > { %p1477_p1 = scmp.ge.s32.totalorder %s1731_s21, 2  ;;  %s1303_s12 = sand.u32 1, %s1719_s18  }
 0x39e   : > { %s1304_s13 = scalar_lea.sflag [#allocation5], %s1303_s12 }
 0x39f   : > { %p1474_p2 = pnand %p1477_p1, %p1834_p6 }
 0x3a1   : > { %1714 = dma.done.wait (!%p1474_p2), %s1304_s13, 768  }
 0x3a2   : > { %1716 = vsyncadd (!%p1474_p2), %s1304_s13, 4294966528  ;;  %p15_p3 = scmp.ge.s32.totalorder %s1817_s24, 4   ;;  %s2294_s18 = smov %s1723_s19 }
 0x3a3   : > { %s2295_s19 = smov %s1727_s20  ;;  %s2296_s20 = smov %s1828_s27 }
 0x3a4   : > { %s2297_s21 = smov %s1817_s24  ;;  %17 = sbr.rel (!%p15_p3) target bundleno = 3 (0x3), region = 80 }
 0x3ab   :  { %1309 = vsyncpa [#allocation5], 1 }
 0x3ac   :  { %1311 = vsyncpa [#allocation5 + $0x1], 1 }

</bundles_post_ra>
